<compile_context>
chip_gen: v7x
topology: tpu7x:2x2x1
jax: 0.10.0
libtpu: 0.0.40
codegen_flags: <defaults>
</compile_context>

<pallas_src>
import math

import jax
import jax.numpy as jnp
from jax import lax
from jax.experimental import pallas as pl
from jax.experimental.pallas import tpu as pltpu

# ----------------------------- model config (small) -----------------------------
HIDDEN = 32
HEADS = 4
HEAD_DIM = HIDDEN // HEADS
FF_DIM = 64
NUM_LAYERS = 2
SRC_VOCAB = 50
TGT_VOCAB = 50
MAX_SEQ_LEN = 64
LN_EPS = 1e-5
VOCAB_PAD = 128          # lane-dense output for the final projection


# ----------------------------- in-kernel helpers --------------------------------
def _layernorm(z, g, b):
    # z: (L, D), g/b: (1, D)
    mu = jnp.mean(z, axis=-1, keepdims=True)
    var = jnp.mean((z - mu) ** 2, axis=-1, keepdims=True)
    return (z - mu) * lax.rsqrt(var + LN_EPS) * g + b


def _mha_proj(q, k, v, wo, bo, *, causal):
    """Multi-head attention + output projection.

    q: (Lq, D) (scale already folded into the Q projection weights),
    k, v: (Lk, D), wo: (D, D) in (in, out) layout, bo: (1, D).
    Heads are processed with static lane slices; the output projection is
    accumulated per head (concat(o_h) @ Wo == sum_h o_h @ Wo[h*Dh:(h+1)*Dh, :]),
    which avoids an in-kernel lane concatenate.
    """
    Lq, Lk = q.shape[0], k.shape[0]
    acc = None
    for h in range(HEADS):
        sl = slice(h * HEAD_DIM, (h + 1) * HEAD_DIM)
        # scores: contract on the shared head dim of both operands (no transpose).
        s = lax.dot_general(q[:, sl], k[:, sl], (((1,), (1,)), ((), ())),
                            preferred_element_type=jnp.float32)      # (Lq, Lk)
        if causal:
            row = lax.broadcasted_iota(jnp.int32, (Lq, Lk), 0)
            col = lax.broadcasted_iota(jnp.int32, (Lq, Lk), 1)
            s = jnp.where(row >= col, s, -1e30)
        p = jnp.exp(s - jnp.max(s, axis=-1, keepdims=True))
        attn = p * pl.reciprocal(jnp.sum(p, axis=-1, keepdims=True), approx=True)
        o_h = jnp.dot(attn, v[:, sl], preferred_element_type=jnp.float32)      # (Lq, Dh)
        contrib = jnp.dot(o_h, wo[sl, :], preferred_element_type=jnp.float32)  # (Lq, D)
        acc = contrib if acc is None else acc + contrib
    return acc + bo


# ----------------------------- fused layer kernels -------------------------------
def _encoder_layer_kernel(x_ref, wqkv_ref, bqkv_ref, wo_ref, bo_ref,
                          ln1_g_ref, ln1_b_ref,
                          w1_ref, b1_ref, w2_ref, b2_ref,
                          ln2_g_ref, ln2_b_ref, o_ref):
    x = x_ref[0]                                                     # (L, D)
    qkv = jnp.dot(x, wqkv_ref[...], preferred_element_type=jnp.float32) + bqkv_ref[...]
    attn = _mha_proj(qkv[:, :HIDDEN], qkv[:, HIDDEN:2 * HIDDEN], qkv[:, 2 * HIDDEN:],
                     wo_ref[...], bo_ref[...], causal=False)
    x = _layernorm(x + attn, ln1_g_ref[...], ln1_b_ref[...])
    h = jnp.maximum(
        jnp.dot(x, w1_ref[...], preferred_element_type=jnp.float32) + b1_ref[...], 0.0)
    f = jnp.dot(h, w2_ref[...], preferred_element_type=jnp.float32) + b2_ref[...]
    x = _layernorm(x + f, ln2_g_ref[...], ln2_b_ref[...])
    o_ref[0] = x.astype(o_ref.dtype)


def _decoder_layer_kernel(x_ref, enc_ref,
                          s_wqkv_ref, s_bqkv_ref, s_wo_ref, s_bo_ref,
                          ln1_g_ref, ln1_b_ref,
                          c_wq_ref, c_bq_ref, c_wkv_ref, c_bkv_ref, c_wo_ref, c_bo_ref,
                          ln2_g_ref, ln2_b_ref,
                          w1_ref, b1_ref, w2_ref, b2_ref,
                          ln3_g_ref, ln3_b_ref, o_ref):
    x = x_ref[0]                                                     # (Lt, D)
    enc = enc_ref[0]                                                 # (Ls, D)

    # causal self-attention
    qkv = jnp.dot(x, s_wqkv_ref[...], preferred_element_type=jnp.float32) + s_bqkv_ref[...]
    attn = _mha_proj(qkv[:, :HIDDEN], qkv[:, HIDDEN:2 * HIDDEN], qkv[:, 2 * HIDDEN:],
                     s_wo_ref[...], s_bo_ref[...], causal=True)
    x = _layernorm(x + attn, ln1_g_ref[...], ln1_b_ref[...])

    # cross-attention over encoder output (src_mask is None)
    q = jnp.dot(x, c_wq_ref[...], preferred_element_type=jnp.float32) + c_bq_ref[...]
    kv = jnp.dot(enc, c_wkv_ref[...], preferred_element_type=jnp.float32) + c_bkv_ref[...]
    cross = _mha_proj(q, kv[:, :HIDDEN], kv[:, HIDDEN:],
                      c_wo_ref[...], c_bo_ref[...], causal=False)
    x = _layernorm(x + cross, ln2_g_ref[...], ln2_b_ref[...])

    # FFN
    h = jnp.maximum(
        jnp.dot(x, w1_ref[...], preferred_element_type=jnp.float32) + b1_ref[...], 0.0)
    f = jnp.dot(h, w2_ref[...], preferred_element_type=jnp.float32) + b2_ref[...]
    x = _layernorm(x + f, ln3_g_ref[...], ln3_b_ref[...])
    o_ref[0] = x.astype(o_ref.dtype)


def _proj_kernel(y_ref, w_ref, b_ref, o_ref):
    o_ref[...] = (jnp.dot(y_ref[...], w_ref[...], preferred_element_type=jnp.float32)
                  + b_ref[...]).astype(o_ref.dtype)


# ----------------------------- pallas_call wrappers ------------------------------
_ENC_KEYS = ("wqkv", "bqkv", "wo", "bo", "ln1_g", "ln1_b",
             "w1", "b1", "w2", "b2", "ln2_g", "ln2_b")
_DEC_KEYS = ("s_wqkv", "s_bqkv", "s_wo", "s_bo", "ln1_g", "ln1_b",
             "c_wq", "c_bq", "c_wkv", "c_bkv", "c_wo", "c_bo", "ln2_g", "ln2_b",
             "w1", "b1", "w2", "b2", "ln3_g", "ln3_b")


def encoder_layer(p, x):
    B, L, D = x.shape
    weights = [p[k] for k in _ENC_KEYS]
    in_specs = ([pl.BlockSpec((1, L, D), lambda b: (b, 0, 0))] +
                [pl.BlockSpec(w.shape, lambda b: (0, 0)) for w in weights])
    return pl.pallas_call(
        _encoder_layer_kernel,
        out_shape=jax.ShapeDtypeStruct((B, L, D), x.dtype),
        grid=(B,),
        in_specs=in_specs,
        out_specs=pl.BlockSpec((1, L, D), lambda b: (b, 0, 0)),
        input_output_aliases={0: 0},
        compiler_params=pltpu.CompilerParams(dimension_semantics=("parallel",)),
    )(x, *weights)


def decoder_layer(p, x, enc_out):
    B, Lt, D = x.shape
    Ls = enc_out.shape[1]
    weights = [p[k] for k in _DEC_KEYS]
    in_specs = ([pl.BlockSpec((1, Lt, D), lambda b: (b, 0, 0)),
                 pl.BlockSpec((1, Ls, D), lambda b: (b, 0, 0))] +
                [pl.BlockSpec(w.shape, lambda b: (0, 0)) for w in weights])
    return pl.pallas_call(
        _decoder_layer_kernel,
        out_shape=jax.ShapeDtypeStruct((B, Lt, D), x.dtype),
        grid=(B,),
        in_specs=in_specs,
        out_specs=pl.BlockSpec((1, Lt, D), lambda b: (b, 0, 0)),
        input_output_aliases={0: 0},
        compiler_params=pltpu.CompilerParams(dimension_semantics=("parallel",)),
    )(x, enc_out, *weights)


def project(y, w, b):
    """y: (M, D) @ w (D, N) + b (1, N) -> (M, N); N is lane-padded to 128."""
    M, D = y.shape
    N = w.shape[1]
    return pl.pallas_call(
        _proj_kernel,
        out_shape=jax.ShapeDtypeStruct((M, N), y.dtype),
        grid=(1,),
        in_specs=[pl.BlockSpec((M, D), lambda i: (0, 0)),
                  pl.BlockSpec((D, N), lambda i: (0, 0)),
                  pl.BlockSpec((1, N), lambda i: (0, 0))],
        out_specs=pl.BlockSpec((M, N), lambda i: (0, 0)),
    )(y, w, b)


# ----------------------------- forward pass --------------------------------------
def transformer_forward(params, src_ids, tgt_ids):
    pe = params["pe"]

    # ---- encode ----
    x = jnp.take(params["enc_embed"], src_ids, axis=0) + pe[: src_ids.shape[1]]
    for lp in params["enc_layers"]:
        x = encoder_layer(lp, x)
    enc_output = x

    # ---- decode ----
    y = jnp.take(params["dec_embed"], tgt_ids, axis=0) + pe[: tgt_ids.shape[1]]
    for lp in params["dec_layers"]:
        y = decoder_layer(lp, y, enc_output)

    B, Lt, D = y.shape
    logits_pad = project(y.reshape(-1, D), params["proj_w_pad"], params["proj_b_pad"])
    return logits_pad[:, :TGT_VOCAB].reshape(B, Lt, TGT_VOCAB)


# ----------------------------- deterministic param init --------------------------
def positional_encoding_table(max_len, dim):
    position = jnp.arange(max_len, dtype=jnp.float32)[:, None]
    div_term = jnp.exp(jnp.arange(0, dim, 2, dtype=jnp.float32)
                       * (-math.log(10000.0) / dim))
    pe = jnp.zeros((max_len, dim), jnp.float32)
    pe = pe.at[:, 0::2].set(jnp.sin(position * div_term))
    pe = pe.at[:, 1::2].set(jnp.cos(position * div_term))
    return pe


def _init_linear(key, out_dim, in_dim):
    kw, kb = jax.random.split(key)
    bound = 1.0 / math.sqrt(in_dim)
    w = jax.random.uniform(kw, (out_dim, in_dim), jnp.float32, -bound, bound)
    b = jax.random.uniform(kb, (out_dim,), jnp.float32, -bound, bound)
    return w, b


def _init_mha(key):
    ks = jax.random.split(key, 4)
    wq, bq = _init_linear(ks[0], HIDDEN, HIDDEN)
    wk, bk = _init_linear(ks[1], HIDDEN, HIDDEN)
    wv, bv = _init_linear(ks[2], HIDDEN, HIDDEN)
    wo, bo = _init_linear(ks[3], HIDDEN, HIDDEN)
    return dict(wq=wq, bq=bq, wk=wk, bk=bk, wv=wv, bv=bv, wo=wo, bo=bo)


def _init_ffn(key):
    k1, k2 = jax.random.split(key)
    w1, b1 = _init_linear(k1, FF_DIM, HIDDEN)
    w2, b2 = _init_linear(k2, HIDDEN, FF_DIM)
    return dict(w1=w1, b1=b1, w2=w2, b2=b2)


def _init_enc_layer(key):
    k1, k2 = jax.random.split(key)
    return dict(
        self_attn=_init_mha(k1),
        ffn=_init_ffn(k2),
        ln1_g=jnp.ones((HIDDEN,), jnp.float32), ln1_b=jnp.zeros((HIDDEN,), jnp.float32),
        ln2_g=jnp.ones((HIDDEN,), jnp.float32), ln2_b=jnp.zeros((HIDDEN,), jnp.float32),
    )


def _init_dec_layer(key):
    k1, k2, k3 = jax.random.split(key, 3)
    return dict(
        self_attn=_init_mha(k1),
        cross_attn=_init_mha(k2),
        ffn=_init_ffn(k3),
        ln1_g=jnp.ones((HIDDEN,), jnp.float32), ln1_b=jnp.zeros((HIDDEN,), jnp.float32),
        ln2_g=jnp.ones((HIDDEN,), jnp.float32), ln2_b=jnp.zeros((HIDDEN,), jnp.float32),
        ln3_g=jnp.ones((HIDDEN,), jnp.float32), ln3_b=jnp.zeros((HIDDEN,), jnp.float32),
    )


def init_params(key):
    keys = jax.random.split(key, 5 + 2 * NUM_LAYERS)
    params = dict(
        enc_embed=jax.random.normal(keys[0], (SRC_VOCAB, HIDDEN), jnp.float32),
        dec_embed=jax.random.normal(keys[1], (TGT_VOCAB, HIDDEN), jnp.float32),
        pe=positional_encoding_table(MAX_SEQ_LEN, HIDDEN),
        enc_layers=[_init_enc_layer(keys[2 + i]) for i in range(NUM_LAYERS)],
        dec_layers=[_init_dec_layer(keys[2 + NUM_LAYERS + i]) for i in range(NUM_LAYERS)],
    )
    pw, pb = _init_linear(keys[2 + 2 * NUM_LAYERS], TGT_VOCAB, HIDDEN)
    params["proj_w"] = pw
    params["proj_b"] = pb
    return params


# --------------- one-time host-side weight repacking for the kernels -------------
def prepare_params(raw):
    scale = 1.0 / math.sqrt(HEAD_DIM)

    def prep_mha(m):
        wq = m["wq"].T * scale                 # (D, D), attention scale folded in
        bq = (m["bq"] * scale)[None, :]
        wk, wv = m["wk"].T, m["wv"].T
        bk, bv = m["bk"][None, :], m["bv"][None, :]
        return dict(
            wqkv=jnp.concatenate([wq, wk, wv], axis=1),     # (D, 3D)
            bqkv=jnp.concatenate([bq, bk, bv], axis=1),     # (1, 3D)
            wq=wq, bq=bq,
            wkv=jnp.concatenate([wk, wv], axis=1),          # (D, 2D)
            bkv=jnp.concatenate([bk, bv], axis=1),          # (1, 2D)
            wo=m["wo"].T, bo=m["bo"][None, :],
        )

    def prep_ffn(f):
        return dict(w1=f["w1"].T, b1=f["b1"][None, :],
                    w2=f["w2"].T, b2=f["b2"][None, :])

    def prep_enc(lp):
        a, f = prep_mha(lp["self_attn"]), prep_ffn(lp["ffn"])
        return dict(
            wqkv=a["wqkv"], bqkv=a["bqkv"], wo=a["wo"], bo=a["bo"],
            ln1_g=lp["ln1_g"][None, :], ln1_b=lp["ln1_b"][None, :],
            ln2_g=lp["ln2_g"][None, :], ln2_b=lp["ln2_b"][None, :],
            **f,
        )

    def prep_dec(lp):
        sa, ca = prep_mha(lp["self_attn"]), prep_mha(lp["cross_attn"])
        f = prep_ffn(lp["ffn"])
        return dict(
            s_wqkv=sa["wqkv"], s_bqkv=sa["bqkv"], s_wo=sa["wo"], s_bo=sa["bo"],
            ln1_g=lp["ln1_g"][None, :], ln1_b=lp["ln1_b"][None, :],
            c_wq=ca["wq"], c_bq=ca["bq"], c_wkv=ca["wkv"], c_bkv=ca["bkv"],
            c_wo=ca["wo"], c_bo=ca["bo"],
            ln2_g=lp["ln2_g"][None, :], ln2_b=lp["ln2_b"][None, :],
            ln3_g=lp["ln3_g"][None, :], ln3_b=lp["ln3_b"][None, :],
            **f,
        )

    proj_w_pad = jnp.zeros((HIDDEN, VOCAB_PAD), jnp.float32).at[:, :TGT_VOCAB].set(
        raw["proj_w"].T)
    proj_b_pad = jnp.zeros((1, VOCAB_PAD), jnp.float32).at[0, :TGT_VOCAB].set(
        raw["proj_b"])

    return dict(
        enc_embed=raw["enc_embed"], dec_embed=raw["dec_embed"], pe=raw["pe"],
        enc_layers=[prep_enc(lp) for lp in raw["enc_layers"]],
        dec_layers=[prep_dec(lp) for lp in raw["dec_layers"]],
        proj_w_pad=proj_w_pad, proj_b_pad=proj_b_pad,
    )


# ----------------------------- main ----------------------------------------------
if __name__ == "__main__":
    key = jax.random.PRNGKey(0)
    k_param, k_src, k_tgt = jax.random.split(key, 3)

    params = prepare_params(init_params(k_param))

    B, Ls, Lt = 2, 8, 8
    src_ids = jax.random.randint(k_src, (B, Ls), 0, SRC_VOCAB, dtype=jnp.int32)
    tgt_ids = jax.random.randint(k_tgt, (B, Lt), 0, TGT_VOCAB, dtype=jnp.int32)

    # Decoder self-attention uses an in-kernel causal mask (== tril tgt_mask);
    # src_mask is None, matching the reference test configuration.
    fwd = jax.jit(lambda s, t: transformer_forward(params, s, t))
    logits = fwd(src_ids, tgt_ids)
    jax.block_until_ready(logits)

    assert logits.shape == (B, Lt, TGT_VOCAB), logits.shape
    assert bool(jnp.all(jnp.isfinite(logits)))
    print("KERNEL_OK")
</pallas_src>

<mosaic_0001>
module attributes {stable_mosaic.version = 11 : i64} {
  func.func @_encoder_layer_kernel(%arg0: i32, %arg1: memref<1x8x32xf32, #tpu.memory_space<vmem>>, %arg2: memref<32x96xf32, #tpu.memory_space<vmem>>, %arg3: memref<1x96xf32, #tpu.memory_space<vmem>>, %arg4: memref<32x32xf32, #tpu.memory_space<vmem>>, %arg5: memref<1x32xf32, #tpu.memory_space<vmem>>, %arg6: memref<1x32xf32, #tpu.memory_space<vmem>>, %arg7: memref<1x32xf32, #tpu.memory_space<vmem>>, %arg8: memref<32x64xf32, #tpu.memory_space<vmem>>, %arg9: memref<1x64xf32, #tpu.memory_space<vmem>>, %arg10: memref<64x32xf32, #tpu.memory_space<vmem>>, %arg11: memref<1x32xf32, #tpu.memory_space<vmem>>, %arg12: memref<1x32xf32, #tpu.memory_space<vmem>>, %arg13: memref<1x32xf32, #tpu.memory_space<vmem>>, %arg14: memref<1x8x32xf32, #tpu.memory_space<vmem>>) attributes {dimension_semantics = [#tpu.dimension_semantics<parallel>], iteration_bounds = array<i64: 2>, scalar_prefetch = 0 : i64, scratch_operands = 0 : i64, tpu.core_type = #tpu.core_type<tc>, window_params = [{transform_indices = @transform_0, window_bounds = array<i64: 1, 8, 32>}, {pipeline_mode = #tpu.pipeline_mode<synchronous>, transform_indices = @transform_1, window_bounds = array<i64: 32, 96>}, {pipeline_mode = #tpu.pipeline_mode<synchronous>, transform_indices = @transform_2, window_bounds = array<i64: 1, 96>}, {pipeline_mode = #tpu.pipeline_mode<synchronous>, transform_indices = @transform_3, window_bounds = array<i64: 32, 32>}, {pipeline_mode = #tpu.pipeline_mode<synchronous>, transform_indices = @transform_4, window_bounds = array<i64: 1, 32>}, {pipeline_mode = #tpu.pipeline_mode<synchronous>, transform_indices = @transform_5, window_bounds = array<i64: 1, 32>}, {pipeline_mode = #tpu.pipeline_mode<synchronous>, transform_indices = @transform_6, window_bounds = array<i64: 1, 32>}, {pipeline_mode = #tpu.pipeline_mode<synchronous>, transform_indices = @transform_7, window_bounds = array<i64: 32, 64>}, {pipeline_mode = #tpu.pipeline_mode<synchronous>, transform_indices = @transform_8, window_bounds = array<i64: 1, 64>}, {pipeline_mode = #tpu.pipeline_mode<synchronous>, transform_indices = @transform_9, window_bounds = array<i64: 64, 32>}, {pipeline_mode = #tpu.pipeline_mode<synchronous>, transform_indices = @transform_10, window_bounds = array<i64: 1, 32>}, {pipeline_mode = #tpu.pipeline_mode<synchronous>, transform_indices = @transform_11, window_bounds = array<i64: 1, 32>}, {pipeline_mode = #tpu.pipeline_mode<synchronous>, transform_indices = @transform_12, window_bounds = array<i64: 1, 32>}, {transform_indices = @transform_13, window_bounds = array<i64: 1, 8, 32>}]} {
    %c0 = arith.constant 0 : index
    %c0_0 = arith.constant 0 : index
    %c0_1 = arith.constant 0 : index
    %0 = vector.load %arg1[%c0, %c0_0, %c0_1] : memref<1x8x32xf32, #tpu.memory_space<vmem>>, vector<1x8x32xf32>
    %1 = vector.shape_cast %0 : vector<1x8x32xf32> to vector<8x32xf32>
    %c0_2 = arith.constant 0 : index
    %c0_3 = arith.constant 0 : index
    %2 = vector.load %arg2[%c0_2, %c0_3] : memref<32x96xf32, #tpu.memory_space<vmem>>, vector<32x96xf32>
    %cst = arith.constant dense<0.000000e+00> : vector<8x96xf32>
    %3 = tpu.matmul %1, %2, %cst {dimension_numbers = #tpu.dot_dimension_numbers<[1], [0], [0], [1], [0, 0, 1, 1], [], []>} : vector<8x32xf32>, vector<32x96xf32>, vector<8x96xf32> -> vector<8x96xf32>
    %c0_4 = arith.constant 0 : index
    %c0_5 = arith.constant 0 : index
    %4 = vector.load %arg3[%c0_4, %c0_5] : memref<1x96xf32, #tpu.memory_space<vmem>>, vector<1x96xf32>
    %5 = vector.broadcast %4 : vector<1x96xf32> to vector<8x96xf32>
    %6 = arith.addf %3, %5 : vector<8x96xf32>
    %7 = vector.extract_strided_slice %6 {offsets = [0, 0], sizes = [8, 32], strides = [1, 1]} : vector<8x96xf32> to vector<8x32xf32>
    %8 = vector.extract_strided_slice %6 {offsets = [0, 32], sizes = [8, 32], strides = [1, 1]} : vector<8x96xf32> to vector<8x32xf32>
    %9 = vector.extract_strided_slice %6 {offsets = [0, 64], sizes = [8, 32], strides = [1, 1]} : vector<8x96xf32> to vector<8x32xf32>
    %c0_6 = arith.constant 0 : index
    %c0_7 = arith.constant 0 : index
    %10 = vector.load %arg4[%c0_6, %c0_7] : memref<32x32xf32, #tpu.memory_space<vmem>>, vector<32x32xf32>
    %c0_8 = arith.constant 0 : index
    %c0_9 = arith.constant 0 : index
    %11 = vector.load %arg5[%c0_8, %c0_9] : memref<1x32xf32, #tpu.memory_space<vmem>>, vector<1x32xf32>
    %12 = vector.extract_strided_slice %7 {offsets = [0, 0], sizes = [8, 8], strides = [1, 1]} : vector<8x32xf32> to vector<8x8xf32>
    %13 = vector.extract_strided_slice %8 {offsets = [0, 0], sizes = [8, 8], strides = [1, 1]} : vector<8x32xf32> to vector<8x8xf32>
    %cst_10 = arith.constant dense<0.000000e+00> : vector<8x8xf32>
    %14 = tpu.matmul %12, %13, %cst_10 {dimension_numbers = #tpu.dot_dimension_numbers<[1], [1], [0], [0], [0, 0, 1, 0], [], []>} : vector<8x8xf32>, vector<8x8xf32>, vector<8x8xf32> -> vector<8x8xf32>
    %cst_11 = arith.constant dense<0xFF800000> : vector<8xf32>
    %15 = vector.multi_reduction <maximumf>, %14, %cst_11 [1] : vector<8x8xf32> to vector<8xf32>
    %16 = vector.shape_cast %15 : vector<8xf32> to vector<8x1xf32>
    %17 = vector.broadcast %16 : vector<8x1xf32> to vector<8x8xf32>
    %18 = arith.subf %14, %17 : vector<8x8xf32>
    %19 = math.exp %18 : vector<8x8xf32>
    %cst_12 = arith.constant dense<0.000000e+00> : vector<8xf32>
    %20 = vector.multi_reduction <add>, %19, %cst_12 [1] : vector<8x8xf32> to vector<8xf32>
    %21 = vector.shape_cast %20 : vector<8xf32> to vector<8x1xf32>
    %22 = tpu.reciprocal %21 {approx = true} : vector<8x1xf32> -> vector<8x1xf32>
    %23 = vector.broadcast %22 : vector<8x1xf32> to vector<8x8xf32>
    %24 = arith.mulf %19, %23 : vector<8x8xf32>
    %25 = vector.extract_strided_slice %9 {offsets = [0, 0], sizes = [8, 8], strides = [1, 1]} : vector<8x32xf32> to vector<8x8xf32>
    %cst_13 = arith.constant dense<0.000000e+00> : vector<8x8xf32>
    %26 = tpu.matmul %24, %25, %cst_13 {dimension_numbers = #tpu.dot_dimension_numbers<[1], [0], [0], [1], [0, 0, 1, 1], [], []>} : vector<8x8xf32>, vector<8x8xf32>, vector<8x8xf32> -> vector<8x8xf32>
    %27 = vector.extract_strided_slice %10 {offsets = [0, 0], sizes = [8, 32], strides = [1, 1]} : vector<32x32xf32> to vector<8x32xf32>
    %cst_14 = arith.constant dense<0.000000e+00> : vector<8x32xf32>
    %28 = tpu.matmul %26, %27, %cst_14 {dimension_numbers = #tpu.dot_dimension_numbers<[1], [0], [0], [1], [0, 0, 1, 1], [], []>} : vector<8x8xf32>, vector<8x32xf32>, vector<8x32xf32> -> vector<8x32xf32>
    %29 = vector.extract_strided_slice %7 {offsets = [0, 8], sizes = [8, 8], strides = [1, 1]} : vector<8x32xf32> to vector<8x8xf32>
    %30 = vector.extract_strided_slice %8 {offsets = [0, 8], sizes = [8, 8], strides = [1, 1]} : vector<8x32xf32> to vector<8x8xf32>
    %cst_15 = arith.constant dense<0.000000e+00> : vector<8x8xf32>
    %31 = tpu.matmul %29, %30, %cst_15 {dimension_numbers = #tpu.dot_dimension_numbers<[1], [1], [0], [0], [0, 0, 1, 0], [], []>} : vector<8x8xf32>, vector<8x8xf32>, vector<8x8xf32> -> vector<8x8xf32>
    %cst_16 = arith.constant dense<0xFF800000> : vector<8xf32>
    %32 = vector.multi_reduction <maximumf>, %31, %cst_16 [1] : vector<8x8xf32> to vector<8xf32>
    %33 = vector.shape_cast %32 : vector<8xf32> to vector<8x1xf32>
    %34 = vector.broadcast %33 : vector<8x1xf32> to vector<8x8xf32>
    %35 = arith.subf %31, %34 : vector<8x8xf32>
    %36 = math.exp %35 : vector<8x8xf32>
    %cst_17 = arith.constant dense<0.000000e+00> : vector<8xf32>
    %37 = vector.multi_reduction <add>, %36, %cst_17 [1] : vector<8x8xf32> to vector<8xf32>
    %38 = vector.shape_cast %37 : vector<8xf32> to vector<8x1xf32>
    %39 = tpu.reciprocal %38 {approx = true} : vector<8x1xf32> -> vector<8x1xf32>
    %40 = vector.broadcast %39 : vector<8x1xf32> to vector<8x8xf32>
    %41 = arith.mulf %36, %40 : vector<8x8xf32>
    %42 = vector.extract_strided_slice %9 {offsets = [0, 8], sizes = [8, 8], strides = [1, 1]} : vector<8x32xf32> to vector<8x8xf32>
    %cst_18 = arith.constant dense<0.000000e+00> : vector<8x8xf32>
    %43 = tpu.matmul %41, %42, %cst_18 {dimension_numbers = #tpu.dot_dimension_numbers<[1], [0], [0], [1], [0, 0, 1, 1], [], []>} : vector<8x8xf32>, vector<8x8xf32>, vector<8x8xf32> -> vector<8x8xf32>
    %44 = vector.extract_strided_slice %10 {offsets = [8, 0], sizes = [8, 32], strides = [1, 1]} : vector<32x32xf32> to vector<8x32xf32>
    %cst_19 = arith.constant dense<0.000000e+00> : vector<8x32xf32>
    %45 = tpu.matmul %43, %44, %cst_19 {dimension_numbers = #tpu.dot_dimension_numbers<[1], [0], [0], [1], [0, 0, 1, 1], [], []>} : vector<8x8xf32>, vector<8x32xf32>, vector<8x32xf32> -> vector<8x32xf32>
    %46 = arith.addf %28, %45 : vector<8x32xf32>
    %47 = vector.extract_strided_slice %7 {offsets = [0, 16], sizes = [8, 8], strides = [1, 1]} : vector<8x32xf32> to vector<8x8xf32>
    %48 = vector.extract_strided_slice %8 {offsets = [0, 16], sizes = [8, 8], strides = [1, 1]} : vector<8x32xf32> to vector<8x8xf32>
    %cst_20 = arith.constant dense<0.000000e+00> : vector<8x8xf32>
    %49 = tpu.matmul %47, %48, %cst_20 {dimension_numbers = #tpu.dot_dimension_numbers<[1], [1], [0], [0], [0, 0, 1, 0], [], []>} : vector<8x8xf32>, vector<8x8xf32>, vector<8x8xf32> -> vector<8x8xf32>
    %cst_21 = arith.constant dense<0xFF800000> : vector<8xf32>
    %50 = vector.multi_reduction <maximumf>, %49, %cst_21 [1] : vector<8x8xf32> to vector<8xf32>
    %51 = vector.shape_cast %50 : vector<8xf32> to vector<8x1xf32>
    %52 = vector.broadcast %51 : vector<8x1xf32> to vector<8x8xf32>
    %53 = arith.subf %49, %52 : vector<8x8xf32>
    %54 = math.exp %53 : vector<8x8xf32>
    %cst_22 = arith.constant dense<0.000000e+00> : vector<8xf32>
    %55 = vector.multi_reduction <add>, %54, %cst_22 [1] : vector<8x8xf32> to vector<8xf32>
    %56 = vector.shape_cast %55 : vector<8xf32> to vector<8x1xf32>
    %57 = tpu.reciprocal %56 {approx = true} : vector<8x1xf32> -> vector<8x1xf32>
    %58 = vector.broadcast %57 : vector<8x1xf32> to vector<8x8xf32>
    %59 = arith.mulf %54, %58 : vector<8x8xf32>
    %60 = vector.extract_strided_slice %9 {offsets = [0, 16], sizes = [8, 8], strides = [1, 1]} : vector<8x32xf32> to vector<8x8xf32>
    %cst_23 = arith.constant dense<0.000000e+00> : vector<8x8xf32>
    %61 = tpu.matmul %59, %60, %cst_23 {dimension_numbers = #tpu.dot_dimension_numbers<[1], [0], [0], [1], [0, 0, 1, 1], [], []>} : vector<8x8xf32>, vector<8x8xf32>, vector<8x8xf32> -> vector<8x8xf32>
    %62 = vector.extract_strided_slice %10 {offsets = [16, 0], sizes = [8, 32], strides = [1, 1]} : vector<32x32xf32> to vector<8x32xf32>
    %cst_24 = arith.constant dense<0.000000e+00> : vector<8x32xf32>
    %63 = tpu.matmul %61, %62, %cst_24 {dimension_numbers = #tpu.dot_dimension_numbers<[1], [0], [0], [1], [0, 0, 1, 1], [], []>} : vector<8x8xf32>, vector<8x32xf32>, vector<8x32xf32> -> vector<8x32xf32>
    %64 = arith.addf %46, %63 : vector<8x32xf32>
    %65 = vector.extract_strided_slice %7 {offsets = [0, 24], sizes = [8, 8], strides = [1, 1]} : vector<8x32xf32> to vector<8x8xf32>
    %66 = vector.extract_strided_slice %8 {offsets = [0, 24], sizes = [8, 8], strides = [1, 1]} : vector<8x32xf32> to vector<8x8xf32>
    %cst_25 = arith.constant dense<0.000000e+00> : vector<8x8xf32>
    %67 = tpu.matmul %65, %66, %cst_25 {dimension_numbers = #tpu.dot_dimension_numbers<[1], [1], [0], [0], [0, 0, 1, 0], [], []>} : vector<8x8xf32>, vector<8x8xf32>, vector<8x8xf32> -> vector<8x8xf32>
    %cst_26 = arith.constant dense<0xFF800000> : vector<8xf32>
    %68 = vector.multi_reduction <maximumf>, %67, %cst_26 [1] : vector<8x8xf32> to vector<8xf32>
    %69 = vector.shape_cast %68 : vector<8xf32> to vector<8x1xf32>
    %70 = vector.broadcast %69 : vector<8x1xf32> to vector<8x8xf32>
    %71 = arith.subf %67, %70 : vector<8x8xf32>
    %72 = math.exp %71 : vector<8x8xf32>
    %cst_27 = arith.constant dense<0.000000e+00> : vector<8xf32>
    %73 = vector.multi_reduction <add>, %72, %cst_27 [1] : vector<8x8xf32> to vector<8xf32>
    %74 = vector.shape_cast %73 : vector<8xf32> to vector<8x1xf32>
    %75 = tpu.reciprocal %74 {approx = true} : vector<8x1xf32> -> vector<8x1xf32>
    %76 = vector.broadcast %75 : vector<8x1xf32> to vector<8x8xf32>
    %77 = arith.mulf %72, %76 : vector<8x8xf32>
    %78 = vector.extract_strided_slice %9 {offsets = [0, 24], sizes = [8, 8], strides = [1, 1]} : vector<8x32xf32> to vector<8x8xf32>
    %cst_28 = arith.constant dense<0.000000e+00> : vector<8x8xf32>
    %79 = tpu.matmul %77, %78, %cst_28 {dimension_numbers = #tpu.dot_dimension_numbers<[1], [0], [0], [1], [0, 0, 1, 1], [], []>} : vector<8x8xf32>, vector<8x8xf32>, vector<8x8xf32> -> vector<8x8xf32>
    %80 = vector.extract_strided_slice %10 {offsets = [24, 0], sizes = [8, 32], strides = [1, 1]} : vector<32x32xf32> to vector<8x32xf32>
    %cst_29 = arith.constant dense<0.000000e+00> : vector<8x32xf32>
    %81 = tpu.matmul %79, %80, %cst_29 {dimension_numbers = #tpu.dot_dimension_numbers<[1], [0], [0], [1], [0, 0, 1, 1], [], []>} : vector<8x8xf32>, vector<8x32xf32>, vector<8x32xf32> -> vector<8x32xf32>
    %82 = arith.addf %64, %81 : vector<8x32xf32>
    %83 = vector.broadcast %11 : vector<1x32xf32> to vector<8x32xf32>
    %84 = arith.addf %82, %83 : vector<8x32xf32>
    %85 = arith.addf %1, %84 : vector<8x32xf32>
    %c0_30 = arith.constant 0 : index
    %c0_31 = arith.constant 0 : index
    %86 = vector.load %arg6[%c0_30, %c0_31] : memref<1x32xf32, #tpu.memory_space<vmem>>, vector<1x32xf32>
    %c0_32 = arith.constant 0 : index
    %c0_33 = arith.constant 0 : index
    %87 = vector.load %arg7[%c0_32, %c0_33] : memref<1x32xf32, #tpu.memory_space<vmem>>, vector<1x32xf32>
    %cst_34 = arith.constant dense<0.000000e+00> : vector<8xf32>
    %88 = vector.multi_reduction <add>, %85, %cst_34 [1] : vector<8x32xf32> to vector<8xf32>
    %89 = vector.shape_cast %88 : vector<8xf32> to vector<8x1xf32>
    %cst_35 = arith.constant 3.200000e+01 : f32
    %90 = vector.broadcast %cst_35 : f32 to vector<8x1xf32>
    %91 = arith.divf %89, %90 : vector<8x1xf32>
    %92 = vector.broadcast %91 : vector<8x1xf32> to vector<8x32xf32>
    %93 = arith.subf %85, %92 : vector<8x32xf32>
    %94 = arith.mulf %93, %93 : vector<8x32xf32>
    %cst_36 = arith.constant dense<0.000000e+00> : vector<8xf32>
    %95 = vector.multi_reduction <add>, %94, %cst_36 [1] : vector<8x32xf32> to vector<8xf32>
    %96 = vector.shape_cast %95 : vector<8xf32> to vector<8x1xf32>
    %cst_37 = arith.constant 3.200000e+01 : f32
    %97 = vector.broadcast %cst_37 : f32 to vector<8x1xf32>
    %98 = arith.divf %96, %97 : vector<8x1xf32>
    %99 = vector.broadcast %91 : vector<8x1xf32> to vector<8x32xf32>
    %100 = arith.subf %85, %99 : vector<8x32xf32>
    %cst_38 = arith.constant 9.99999974E-6 : f32
    %101 = vector.broadcast %cst_38 : f32 to vector<8x1xf32>
    %102 = arith.addf %98, %101 : vector<8x1xf32>
    %103 = math.rsqrt %102 : vector<8x1xf32>
    %104 = vector.broadcast %103 : vector<8x1xf32> to vector<8x32xf32>
    %105 = arith.mulf %100, %104 : vector<8x32xf32>
    %106 = vector.broadcast %86 : vector<1x32xf32> to vector<8x32xf32>
    %107 = arith.mulf %105, %106 : vector<8x32xf32>
    %108 = vector.broadcast %87 : vector<1x32xf32> to vector<8x32xf32>
    %109 = arith.addf %107, %108 : vector<8x32xf32>
    %c0_39 = arith.constant 0 : index
    %c0_40 = arith.constant 0 : index
    %110 = vector.load %arg8[%c0_39, %c0_40] : memref<32x64xf32, #tpu.memory_space<vmem>>, vector<32x64xf32>
    %cst_41 = arith.constant dense<0.000000e+00> : vector<8x64xf32>
    %111 = tpu.matmul %109, %110, %cst_41 {dimension_numbers = #tpu.dot_dimension_numbers<[1], [0], [0], [1], [0, 0, 1, 1], [], []>} : vector<8x32xf32>, vector<32x64xf32>, vector<8x64xf32> -> vector<8x64xf32>
    %c0_42 = arith.constant 0 : index
    %c0_43 = arith.constant 0 : index
    %112 = vector.load %arg9[%c0_42, %c0_43] : memref<1x64xf32, #tpu.memory_space<vmem>>, vector<1x64xf32>
    %113 = vector.broadcast %112 : vector<1x64xf32> to vector<8x64xf32>
    %114 = arith.addf %111, %113 : vector<8x64xf32>
    %cst_44 = arith.constant 0.000000e+00 : f32
    %115 = vector.broadcast %cst_44 : f32 to vector<8x64xf32>
    %116 = arith.maximumf %114, %115 : vector<8x64xf32>
    %c0_45 = arith.constant 0 : index
    %c0_46 = arith.constant 0 : index
    %117 = vector.load %arg10[%c0_45, %c0_46] : memref<64x32xf32, #tpu.memory_space<vmem>>, vector<64x32xf32>
    %cst_47 = arith.constant dense<0.000000e+00> : vector<8x32xf32>
    %118 = tpu.matmul %116, %117, %cst_47 {dimension_numbers = #tpu.dot_dimension_numbers<[1], [0], [0], [1], [0, 0, 1, 1], [], []>} : vector<8x64xf32>, vector<64x32xf32>, vector<8x32xf32> -> vector<8x32xf32>
    %c0_48 = arith.constant 0 : index
    %c0_49 = arith.constant 0 : index
    %119 = vector.load %arg11[%c0_48, %c0_49] : memref<1x32xf32, #tpu.memory_space<vmem>>, vector<1x32xf32>
    %120 = vector.broadcast %119 : vector<1x32xf32> to vector<8x32xf32>
    %121 = arith.addf %118, %120 : vector<8x32xf32>
    %122 = arith.addf %109, %121 : vector<8x32xf32>
    %c0_50 = arith.constant 0 : index
    %c0_51 = arith.constant 0 : index
    %123 = vector.load %arg12[%c0_50, %c0_51] : memref<1x32xf32, #tpu.memory_space<vmem>>, vector<1x32xf32>
    %c0_52 = arith.constant 0 : index
    %c0_53 = arith.constant 0 : index
    %124 = vector.load %arg13[%c0_52, %c0_53] : memref<1x32xf32, #tpu.memory_space<vmem>>, vector<1x32xf32>
    %cst_54 = arith.constant dense<0.000000e+00> : vector<8xf32>
    %125 = vector.multi_reduction <add>, %122, %cst_54 [1] : vector<8x32xf32> to vector<8xf32>
    %126 = vector.shape_cast %125 : vector<8xf32> to vector<8x1xf32>
    %cst_55 = arith.constant 3.200000e+01 : f32
    %127 = vector.broadcast %cst_55 : f32 to vector<8x1xf32>
    %128 = arith.divf %126, %127 : vector<8x1xf32>
    %129 = vector.broadcast %128 : vector<8x1xf32> to vector<8x32xf32>
    %130 = arith.subf %122, %129 : vector<8x32xf32>
    %131 = arith.mulf %130, %130 : vector<8x32xf32>
    %cst_56 = arith.constant dense<0.000000e+00> : vector<8xf32>
    %132 = vector.multi_reduction <add>, %131, %cst_56 [1] : vector<8x32xf32> to vector<8xf32>
    %133 = vector.shape_cast %132 : vector<8xf32> to vector<8x1xf32>
    %cst_57 = arith.constant 3.200000e+01 : f32
    %134 = vector.broadcast %cst_57 : f32 to vector<8x1xf32>
    %135 = arith.divf %133, %134 : vector<8x1xf32>
    %136 = vector.broadcast %128 : vector<8x1xf32> to vector<8x32xf32>
    %137 = arith.subf %122, %136 : vector<8x32xf32>
    %cst_58 = arith.constant 9.99999974E-6 : f32
    %138 = vector.broadcast %cst_58 : f32 to vector<8x1xf32>
    %139 = arith.addf %135, %138 : vector<8x1xf32>
    %140 = math.rsqrt %139 : vector<8x1xf32>
    %141 = vector.broadcast %140 : vector<8x1xf32> to vector<8x32xf32>
    %142 = arith.mulf %137, %141 : vector<8x32xf32>
    %143 = vector.broadcast %123 : vector<1x32xf32> to vector<8x32xf32>
    %144 = arith.mulf %142, %143 : vector<8x32xf32>
    %145 = vector.broadcast %124 : vector<1x32xf32> to vector<8x32xf32>
    %146 = arith.addf %144, %145 : vector<8x32xf32>
    %c0_59 = arith.constant 0 : index
    %c0_60 = arith.constant 0 : index
    %c0_61 = arith.constant 0 : index
    %147 = vector.load %arg14[%c0_59, %c0_60, %c0_61] : memref<1x8x32xf32, #tpu.memory_space<vmem>>, vector<1x8x32xf32>
    %148 = vector.shape_cast %147 : vector<1x8x32xf32> to vector<8x32xf32>
    %149 = vector.shape_cast %146 : vector<8x32xf32> to vector<1x8x32xf32>
    tpu.vector_store %arg14[%c0_59, %c0_60, %c0_61], %149 {strides = array<i32>} : memref<1x8x32xf32, #tpu.memory_space<vmem>>, vector<1x8x32xf32>,
    return
  }
  func.func @transform_0(%arg0: i32) -> (i32, i32, i32) {
    %c0_i32 = arith.constant 0 : i32
    %c0_i32_0 = arith.constant 0 : i32
    %c0_i32_1 = arith.constant 0 : i32
    return %arg0, %c0_i32, %c0_i32_0 : i32, i32, i32
  }
  func.func @transform_1(%arg0: i32) -> (i32, i32) {
    %c0_i32 = arith.constant 0 : i32
    %c0_i32_0 = arith.constant 0 : i32
    %c0_i32_1 = arith.constant 0 : i32
    return %c0_i32, %c0_i32_0 : i32, i32
  }
  func.func @transform_2(%arg0: i32) -> (i32, i32) {
    %c0_i32 = arith.constant 0 : i32
    %c0_i32_0 = arith.constant 0 : i32
    %c0_i32_1 = arith.constant 0 : i32
    return %c0_i32, %c0_i32_0 : i32, i32
  }
  func.func @transform_3(%arg0: i32) -> (i32, i32) {
    %c0_i32 = arith.constant 0 : i32
    %c0_i32_0 = arith.constant 0 : i32
    %c0_i32_1 = arith.constant 0 : i32
    return %c0_i32, %c0_i32_0 : i32, i32
  }
  func.func @transform_4(%arg0: i32) -> (i32, i32) {
    %c0_i32 = arith.constant 0 : i32
    %c0_i32_0 = arith.constant 0 : i32
    %c0_i32_1 = arith.constant 0 : i32
    return %c0_i32, %c0_i32_0 : i32, i32
  }
  func.func @transform_5(%arg0: i32) -> (i32, i32) {
    %c0_i32 = arith.constant 0 : i32
    %c0_i32_0 = arith.constant 0 : i32
    %c0_i32_1 = arith.constant 0 : i32
    return %c0_i32, %c0_i32_0 : i32, i32
  }
  func.func @transform_6(%arg0: i32) -> (i32, i32) {
    %c0_i32 = arith.constant 0 : i32
    %c0_i32_0 = arith.constant 0 : i32
    %c0_i32_1 = arith.constant 0 : i32
    return %c0_i32, %c0_i32_0 : i32, i32
  }
  func.func @transform_7(%arg0: i32) -> (i32, i32) {
    %c0_i32 = arith.constant 0 : i32
    %c0_i32_0 = arith.constant 0 : i32
    %c0_i32_1 = arith.constant 0 : i32
    return %c0_i32, %c0_i32_0 : i32, i32
  }
  func.func @transform_8(%arg0: i32) -> (i32, i32) {
    %c0_i32 = arith.constant 0 : i32
    %c0_i32_0 = arith.constant 0 : i32
    %c0_i32_1 = arith.constant 0 : i32
    return %c0_i32, %c0_i32_0 : i32, i32
  }
  func.func @transform_9(%arg0: i32) -> (i32, i32) {
    %c0_i32 = arith.constant 0 : i32
    %c0_i32_0 = arith.constant 0 : i32
    %c0_i32_1 = arith.constant 0 : i32
    return %c0_i32, %c0_i32_0 : i32, i32
  }
  func.func @transform_10(%arg0: i32) -> (i32, i32) {
    %c0_i32 = arith.constant 0 : i32
    %c0_i32_0 = arith.constant 0 : i32
    %c0_i32_1 = arith.constant 0 : i32
    return %c0_i32, %c0_i32_0 : i32, i32
  }
  func.func @transform_11(%arg0: i32) -> (i32, i32) {
    %c0_i32 = arith.constant 0 : i32
    %c0_i32_0 = arith.constant 0 : i32
    %c0_i32_1 = arith.constant 0 : i32
    return %c0_i32, %c0_i32_0 : i32, i32
  }
  func.func @transform_12(%arg0: i32) -> (i32, i32) {
    %c0_i32 = arith.constant 0 : i32
    %c0_i32_0 = arith.constant 0 : i32
    %c0_i32_1 = arith.constant 0 : i32
    return %c0_i32, %c0_i32_0 : i32, i32
  }
  func.func @transform_13(%arg0: i32) -> (i32, i32, i32) {
    %c0_i32 = arith.constant 0 : i32
    %c0_i32_0 = arith.constant 0 : i32
    %c0_i32_1 = arith.constant 0 : i32
    return %arg0, %c0_i32, %c0_i32_0 : i32, i32, i32
  }
}

module attributes {stable_mosaic.version = 11 : i64} {
  func.func @_proj_kernel(%arg0: i32, %arg1: memref<16x32xf32, #tpu.memory_space<vmem>>, %arg2: memref<32x128xf32, #tpu.memory_space<vmem>>, %arg3: memref<1x128xf32, #tpu.memory_space<vmem>>, %arg4: memref<16x128xf32, #tpu.memory_space<vmem>>) attributes {dimension_semantics = [#tpu.dimension_semantics<arbitrary>], iteration_bounds = array<i64: 1>, scalar_prefetch = 0 : i64, scratch_operands = 0 : i64, tpu.core_type = #tpu.core_type<tc>, window_params = [{pipeline_mode = #tpu.pipeline_mode<synchronous>, transform_indices = @transform_0, window_bounds = array<i64: 16, 32>}, {pipeline_mode = #tpu.pipeline_mode<synchronous>, transform_indices = @transform_1, window_bounds = array<i64: 32, 128>}, {pipeline_mode = #tpu.pipeline_mode<synchronous>, transform_indices = @transform_2, window_bounds = array<i64: 1, 128>}, {pipeline_mode = #tpu.pipeline_mode<synchronous>, transform_indices = @transform_3, window_bounds = array<i64: 16, 128>}]} {
    %c0 = arith.constant 0 : index
    %c0_0 = arith.constant 0 : index
    %0 = vector.load %arg1[%c0, %c0_0] : memref<16x32xf32, #tpu.memory_space<vmem>>, vector<16x32xf32>
    %c0_1 = arith.constant 0 : index
    %c0_2 = arith.constant 0 : index
    %1 = vector.load %arg2[%c0_1, %c0_2] : memref<32x128xf32, #tpu.memory_space<vmem>>, vector<32x128xf32>
    %cst = arith.constant dense<0.000000e+00> : vector<16x128xf32>
    %2 = tpu.matmul %0, %1, %cst {dimension_numbers = #tpu.dot_dimension_numbers<[1], [0], [0], [1], [0, 0, 1, 1], [], []>} : vector<16x32xf32>, vector<32x128xf32>, vector<16x128xf32> -> vector<16x128xf32>
    %c0_3 = arith.constant 0 : index
    %c0_4 = arith.constant 0 : index
    %3 = vector.load %arg3[%c0_3, %c0_4] : memref<1x128xf32, #tpu.memory_space<vmem>>, vector<1x128xf32>
    %4 = vector.broadcast %3 : vector<1x128xf32> to vector<16x128xf32>
    %5 = arith.addf %2, %4 : vector<16x128xf32>
    %c0_5 = arith.constant 0 : index
    %c0_6 = arith.constant 0 : index
    %6 = vector.load %arg4[%c0_5, %c0_6] : memref<16x128xf32, #tpu.memory_space<vmem>>, vector<16x128xf32>
    tpu.vector_store %arg4[%c0_5, %c0_6], %5 {strides = array<i32>} : memref<16x128xf32, #tpu.memory_space<vmem>>, vector<16x128xf32>,
    return
  }
  func.func @transform_0(%arg0: i32) -> (i32, i32) {
    %c0_i32 = arith.constant 0 : i32
    %c0_i32_0 = arith.constant 0 : i32
    %c0_i32_1 = arith.constant 0 : i32
    return %c0_i32, %c0_i32_0 : i32, i32
  }
  func.func @transform_1(%arg0: i32) -> (i32, i32) {
    %c0_i32 = arith.constant 0 : i32
    %c0_i32_0 = arith.constant 0 : i32
    %c0_i32_1 = arith.constant 0 : i32
    return %c0_i32, %c0_i32_0 : i32, i32
  }
  func.func @transform_2(%arg0: i32) -> (i32, i32) {
    %c0_i32 = arith.constant 0 : i32
    %c0_i32_0 = arith.constant 0 : i32
    %c0_i32_1 = arith.constant 0 : i32
    return %c0_i32, %c0_i32_0 : i32, i32
  }
  func.func @transform_3(%arg0: i32) -> (i32, i32) {
    %c0_i32 = arith.constant 0 : i32
    %c0_i32_0 = arith.constant 0 : i32
    %c0_i32_1 = arith.constant 0 : i32
    return %c0_i32, %c0_i32_0 : i32, i32
  }
}

module attributes {stable_mosaic.version = 11 : i64} {
  func.func @_decoder_layer_kernel(%arg0: i32, %arg1: memref<1x8x32xf32, #tpu.memory_space<vmem>>, %arg2: memref<1x8x32xf32, #tpu.memory_space<vmem>>, %arg3: memref<32x96xf32, #tpu.memory_space<vmem>>, %arg4: memref<1x96xf32, #tpu.memory_space<vmem>>, %arg5: memref<32x32xf32, #tpu.memory_space<vmem>>, %arg6: memref<1x32xf32, #tpu.memory_space<vmem>>, %arg7: memref<1x32xf32, #tpu.memory_space<vmem>>, %arg8: memref<1x32xf32, #tpu.memory_space<vmem>>, %arg9: memref<32x32xf32, #tpu.memory_space<vmem>>, %arg10: memref<1x32xf32, #tpu.memory_space<vmem>>, %arg11: memref<32x64xf32, #tpu.memory_space<vmem>>, %arg12: memref<1x64xf32, #tpu.memory_space<vmem>>, %arg13: memref<32x32xf32, #tpu.memory_space<vmem>>, %arg14: memref<1x32xf32, #tpu.memory_space<vmem>>, %arg15: memref<1x32xf32, #tpu.memory_space<vmem>>, %arg16: memref<1x32xf32, #tpu.memory_space<vmem>>, %arg17: memref<32x64xf32, #tpu.memory_space<vmem>>, %arg18: memref<1x64xf32, #tpu.memory_space<vmem>>, %arg19: memref<64x32xf32, #tpu.memory_space<vmem>>, %arg20: memref<1x32xf32, #tpu.memory_space<vmem>>, %arg21: memref<1x32xf32, #tpu.memory_space<vmem>>, %arg22: memref<1x32xf32, #tpu.memory_space<vmem>>, %arg23: memref<1x8x32xf32, #tpu.memory_space<vmem>>) attributes {dimension_semantics = [#tpu.dimension_semantics<parallel>], iteration_bounds = array<i64: 2>, scalar_prefetch = 0 : i64, scratch_operands = 0 : i64, tpu.core_type = #tpu.core_type<tc>, window_params = [{transform_indices = @transform_0, window_bounds = array<i64: 1, 8, 32>}, {transform_indices = @transform_1, window_bounds = array<i64: 1, 8, 32>}, {pipeline_mode = #tpu.pipeline_mode<synchronous>, transform_indices = @transform_2, window_bounds = array<i64: 32, 96>}, {pipeline_mode = #tpu.pipeline_mode<synchronous>, transform_indices = @transform_3, window_bounds = array<i64: 1, 96>}, {pipeline_mode = #tpu.pipeline_mode<synchronous>, transform_indices = @transform_4, window_bounds = array<i64: 32, 32>}, {pipeline_mode = #tpu.pipeline_mode<synchronous>, transform_indices = @transform_5, window_bounds = array<i64: 1, 32>}, {pipeline_mode = #tpu.pipeline_mode<synchronous>, transform_indices = @transform_6, window_bounds = array<i64: 1, 32>}, {pipeline_mode = #tpu.pipeline_mode<synchronous>, transform_indices = @transform_7, window_bounds = array<i64: 1, 32>}, {pipeline_mode = #tpu.pipeline_mode<synchronous>, transform_indices = @transform_8, window_bounds = array<i64: 32, 32>}, {pipeline_mode = #tpu.pipeline_mode<synchronous>, transform_indices = @transform_9, window_bounds = array<i64: 1, 32>}, {pipeline_mode = #tpu.pipeline_mode<synchronous>, transform_indices = @transform_10, window_bounds = array<i64: 32, 64>}, {pipeline_mode = #tpu.pipeline_mode<synchronous>, transform_indices = @transform_11, window_bounds = array<i64: 1, 64>}, {pipeline_mode = #tpu.pipeline_mode<synchronous>, transform_indices = @transform_12, window_bounds = array<i64: 32, 32>}, {pipeline_mode = #tpu.pipeline_mode<synchronous>, transform_indices = @transform_13, window_bounds = array<i64: 1, 32>}, {pipeline_mode = #tpu.pipeline_mode<synchronous>, transform_indices = @transform_14, window_bounds = array<i64: 1, 32>}, {pipeline_mode = #tpu.pipeline_mode<synchronous>, transform_indices = @transform_15, window_bounds = array<i64: 1, 32>}, {pipeline_mode = #tpu.pipeline_mode<synchronous>, transform_indices = @transform_16, window_bounds = array<i64: 32, 64>}, {pipeline_mode = #tpu.pipeline_mode<synchronous>, transform_indices = @transform_17, window_bounds = array<i64: 1, 64>}, {pipeline_mode = #tpu.pipeline_mode<synchronous>, transform_indices = @transform_18, window_bounds = array<i64: 64, 32>}, {pipeline_mode = #tpu.pipeline_mode<synchronous>, transform_indices = @transform_19, window_bounds = array<i64: 1, 32>}, {pipeline_mode = #tpu.pipeline_mode<synchronous>, transform_indices = @transform_20, window_bounds = array<i64: 1, 32>}, {pipeline_mode = #tpu.pipeline_mode<synchronous>, transform_indices = @transform_21, window_bounds = array<i64: 1, 32>}, {transform_indices = @transform_22, window_bounds = array<i64: 1, 8, 32>}]} {
    %c0 = arith.constant 0 : index
    %c0_0 = arith.constant 0 : index
    %c0_1 = arith.constant 0 : index
    %0 = vector.load %arg1[%c0, %c0_0, %c0_1] : memref<1x8x32xf32, #tpu.memory_space<vmem>>, vector<1x8x32xf32>
    %1 = vector.shape_cast %0 : vector<1x8x32xf32> to vector<8x32xf32>
    %c0_2 = arith.constant 0 : index
    %c0_3 = arith.constant 0 : index
    %c0_4 = arith.constant 0 : index
    %2 = vector.load %arg2[%c0_2, %c0_3, %c0_4] : memref<1x8x32xf32, #tpu.memory_space<vmem>>, vector<1x8x32xf32>
    %3 = vector.shape_cast %2 : vector<1x8x32xf32> to vector<8x32xf32>
    %c0_5 = arith.constant 0 : index
    %c0_6 = arith.constant 0 : index
    %4 = vector.load %arg3[%c0_5, %c0_6] : memref<32x96xf32, #tpu.memory_space<vmem>>, vector<32x96xf32>
    %cst = arith.constant dense<0.000000e+00> : vector<8x96xf32>
    %5 = tpu.matmul %1, %4, %cst {dimension_numbers = #tpu.dot_dimension_numbers<[1], [0], [0], [1], [0, 0, 1, 1], [], []>} : vector<8x32xf32>, vector<32x96xf32>, vector<8x96xf32> -> vector<8x96xf32>
    %c0_7 = arith.constant 0 : index
    %c0_8 = arith.constant 0 : index
    %6 = vector.load %arg4[%c0_7, %c0_8] : memref<1x96xf32, #tpu.memory_space<vmem>>, vector<1x96xf32>
    %7 = vector.broadcast %6 : vector<1x96xf32> to vector<8x96xf32>
    %8 = arith.addf %5, %7 : vector<8x96xf32>
    %9 = vector.extract_strided_slice %8 {offsets = [0, 0], sizes = [8, 32], strides = [1, 1]} : vector<8x96xf32> to vector<8x32xf32>
    %10 = vector.extract_strided_slice %8 {offsets = [0, 32], sizes = [8, 32], strides = [1, 1]} : vector<8x96xf32> to vector<8x32xf32>
    %11 = vector.extract_strided_slice %8 {offsets = [0, 64], sizes = [8, 32], strides = [1, 1]} : vector<8x96xf32> to vector<8x32xf32>
    %c0_9 = arith.constant 0 : index
    %c0_10 = arith.constant 0 : index
    %12 = vector.load %arg5[%c0_9, %c0_10] : memref<32x32xf32, #tpu.memory_space<vmem>>, vector<32x32xf32>
    %c0_11 = arith.constant 0 : index
    %c0_12 = arith.constant 0 : index
    %13 = vector.load %arg6[%c0_11, %c0_12] : memref<1x32xf32, #tpu.memory_space<vmem>>, vector<1x32xf32>
    %14 = vector.extract_strided_slice %9 {offsets = [0, 0], sizes = [8, 8], strides = [1, 1]} : vector<8x32xf32> to vector<8x8xf32>
    %15 = vector.extract_strided_slice %10 {offsets = [0, 0], sizes = [8, 8], strides = [1, 1]} : vector<8x32xf32> to vector<8x8xf32>
    %cst_13 = arith.constant dense<0.000000e+00> : vector<8x8xf32>
    %16 = tpu.matmul %14, %15, %cst_13 {dimension_numbers = #tpu.dot_dimension_numbers<[1], [1], [0], [0], [0, 0, 1, 0], [], []>} : vector<8x8xf32>, vector<8x8xf32>, vector<8x8xf32> -> vector<8x8xf32>
    %17 = tpu.iota {dimensions = array<i32: 0>} : vector<8x8xi32>
    %18 = tpu.iota {dimensions = array<i32: 1>} : vector<8x8xi32>
    %19 = arith.cmpi sge, %17, %18 : vector<8x8xi32>
    %cst_14 = arith.constant -1.000000e+30 : f32
    %20 = vector.broadcast %cst_14 : f32 to vector<8x8xf32>
    %21 = arith.select %19, %16, %20 : vector<8x8xi1>, vector<8x8xf32>
    %cst_15 = arith.constant dense<0xFF800000> : vector<8xf32>
    %22 = vector.multi_reduction <maximumf>, %21, %cst_15 [1] : vector<8x8xf32> to vector<8xf32>
    %23 = vector.shape_cast %22 : vector<8xf32> to vector<8x1xf32>
    %24 = vector.broadcast %23 : vector<8x1xf32> to vector<8x8xf32>
    %25 = arith.subf %21, %24 : vector<8x8xf32>
    %26 = math.exp %25 : vector<8x8xf32>
    %cst_16 = arith.constant dense<0.000000e+00> : vector<8xf32>
    %27 = vector.multi_reduction <add>, %26, %cst_16 [1] : vector<8x8xf32> to vector<8xf32>
    %28 = vector.shape_cast %27 : vector<8xf32> to vector<8x1xf32>
    %29 = tpu.reciprocal %28 {approx = true} : vector<8x1xf32> -> vector<8x1xf32>
    %30 = vector.broadcast %29 : vector<8x1xf32> to vector<8x8xf32>
    %31 = arith.mulf %26, %30 : vector<8x8xf32>
    %32 = vector.extract_strided_slice %11 {offsets = [0, 0], sizes = [8, 8], strides = [1, 1]} : vector<8x32xf32> to vector<8x8xf32>
    %cst_17 = arith.constant dense<0.000000e+00> : vector<8x8xf32>
    %33 = tpu.matmul %31, %32, %cst_17 {dimension_numbers = #tpu.dot_dimension_numbers<[1], [0], [0], [1], [0, 0, 1, 1], [], []>} : vector<8x8xf32>, vector<8x8xf32>, vector<8x8xf32> -> vector<8x8xf32>
    %34 = vector.extract_strided_slice %12 {offsets = [0, 0], sizes = [8, 32], strides = [1, 1]} : vector<32x32xf32> to vector<8x32xf32>
    %cst_18 = arith.constant dense<0.000000e+00> : vector<8x32xf32>
    %35 = tpu.matmul %33, %34, %cst_18 {dimension_numbers = #tpu.dot_dimension_numbers<[1], [0], [0], [1], [0, 0, 1, 1], [], []>} : vector<8x8xf32>, vector<8x32xf32>, vector<8x32xf32> -> vector<8x32xf32>
    %36 = vector.extract_strided_slice %9 {offsets = [0, 8], sizes = [8, 8], strides = [1, 1]} : vector<8x32xf32> to vector<8x8xf32>
    %37 = vector.extract_strided_slice %10 {offsets = [0, 8], sizes = [8, 8], strides = [1, 1]} : vector<8x32xf32> to vector<8x8xf32>
    %cst_19 = arith.constant dense<0.000000e+00> : vector<8x8xf32>
    %38 = tpu.matmul %36, %37, %cst_19 {dimension_numbers = #tpu.dot_dimension_numbers<[1], [1], [0], [0], [0, 0, 1, 0], [], []>} : vector<8x8xf32>, vector<8x8xf32>, vector<8x8xf32> -> vector<8x8xf32>
    %39 = tpu.iota {dimensions = array<i32: 0>} : vector<8x8xi32>
    %40 = tpu.iota {dimensions = array<i32: 1>} : vector<8x8xi32>
    %41 = arith.cmpi sge, %39, %40 : vector<8x8xi32>
    %cst_20 = arith.constant -1.000000e+30 : f32
    %42 = vector.broadcast %cst_20 : f32 to vector<8x8xf32>
    %43 = arith.select %41, %38, %42 : vector<8x8xi1>, vector<8x8xf32>
    %cst_21 = arith.constant dense<0xFF800000> : vector<8xf32>
    %44 = vector.multi_reduction <maximumf>, %43, %cst_21 [1] : vector<8x8xf32> to vector<8xf32>
    %45 = vector.shape_cast %44 : vector<8xf32> to vector<8x1xf32>
    %46 = vector.broadcast %45 : vector<8x1xf32> to vector<8x8xf32>
    %47 = arith.subf %43, %46 : vector<8x8xf32>
    %48 = math.exp %47 : vector<8x8xf32>
    %cst_22 = arith.constant dense<0.000000e+00> : vector<8xf32>
    %49 = vector.multi_reduction <add>, %48, %cst_22 [1] : vector<8x8xf32> to vector<8xf32>
    %50 = vector.shape_cast %49 : vector<8xf32> to vector<8x1xf32>
    %51 = tpu.reciprocal %50 {approx = true} : vector<8x1xf32> -> vector<8x1xf32>
    %52 = vector.broadcast %51 : vector<8x1xf32> to vector<8x8xf32>
    %53 = arith.mulf %48, %52 : vector<8x8xf32>
    %54 = vector.extract_strided_slice %11 {offsets = [0, 8], sizes = [8, 8], strides = [1, 1]} : vector<8x32xf32> to vector<8x8xf32>
    %cst_23 = arith.constant dense<0.000000e+00> : vector<8x8xf32>
    %55 = tpu.matmul %53, %54, %cst_23 {dimension_numbers = #tpu.dot_dimension_numbers<[1], [0], [0], [1], [0, 0, 1, 1], [], []>} : vector<8x8xf32>, vector<8x8xf32>, vector<8x8xf32> -> vector<8x8xf32>
    %56 = vector.extract_strided_slice %12 {offsets = [8, 0], sizes = [8, 32], strides = [1, 1]} : vector<32x32xf32> to vector<8x32xf32>
    %cst_24 = arith.constant dense<0.000000e+00> : vector<8x32xf32>
    %57 = tpu.matmul %55, %56, %cst_24 {dimension_numbers = #tpu.dot_dimension_numbers<[1], [0], [0], [1], [0, 0, 1, 1], [], []>} : vector<8x8xf32>, vector<8x32xf32>, vector<8x32xf32> -> vector<8x32xf32>
    %58 = arith.addf %35, %57 : vector<8x32xf32>
    %59 = vector.extract_strided_slice %9 {offsets = [0, 16], sizes = [8, 8], strides = [1, 1]} : vector<8x32xf32> to vector<8x8xf32>
    %60 = vector.extract_strided_slice %10 {offsets = [0, 16], sizes = [8, 8], strides = [1, 1]} : vector<8x32xf32> to vector<8x8xf32>
    %cst_25 = arith.constant dense<0.000000e+00> : vector<8x8xf32>
    %61 = tpu.matmul %59, %60, %cst_25 {dimension_numbers = #tpu.dot_dimension_numbers<[1], [1], [0], [0], [0, 0, 1, 0], [], []>} : vector<8x8xf32>, vector<8x8xf32>, vector<8x8xf32> -> vector<8x8xf32>
    %62 = tpu.iota {dimensions = array<i32: 0>} : vector<8x8xi32>
    %63 = tpu.iota {dimensions = array<i32: 1>} : vector<8x8xi32>
    %64 = arith.cmpi sge, %62, %63 : vector<8x8xi32>
    %cst_26 = arith.constant -1.000000e+30 : f32
    %65 = vector.broadcast %cst_26 : f32 to vector<8x8xf32>
    %66 = arith.select %64, %61, %65 : vector<8x8xi1>, vector<8x8xf32>
    %cst_27 = arith.constant dense<0xFF800000> : vector<8xf32>
    %67 = vector.multi_reduction <maximumf>, %66, %cst_27 [1] : vector<8x8xf32> to vector<8xf32>
    %68 = vector.shape_cast %67 : vector<8xf32> to vector<8x1xf32>
    %69 = vector.broadcast %68 : vector<8x1xf32> to vector<8x8xf32>
    %70 = arith.subf %66, %69 : vector<8x8xf32>
    %71 = math.exp %70 : vector<8x8xf32>
    %cst_28 = arith.constant dense<0.000000e+00> : vector<8xf32>
    %72 = vector.multi_reduction <add>, %71, %cst_28 [1] : vector<8x8xf32> to vector<8xf32>
    %73 = vector.shape_cast %72 : vector<8xf32> to vector<8x1xf32>
    %74 = tpu.reciprocal %73 {approx = true} : vector<8x1xf32> -> vector<8x1xf32>
    %75 = vector.broadcast %74 : vector<8x1xf32> to vector<8x8xf32>
    %76 = arith.mulf %71, %75 : vector<8x8xf32>
    %77 = vector.extract_strided_slice %11 {offsets = [0, 16], sizes = [8, 8], strides = [1, 1]} : vector<8x32xf32> to vector<8x8xf32>
    %cst_29 = arith.constant dense<0.000000e+00> : vector<8x8xf32>
    %78 = tpu.matmul %76, %77, %cst_29 {dimension_numbers = #tpu.dot_dimension_numbers<[1], [0], [0], [1], [0, 0, 1, 1], [], []>} : vector<8x8xf32>, vector<8x8xf32>, vector<8x8xf32> -> vector<8x8xf32>
    %79 = vector.extract_strided_slice %12 {offsets = [16, 0], sizes = [8, 32], strides = [1, 1]} : vector<32x32xf32> to vector<8x32xf32>
    %cst_30 = arith.constant dense<0.000000e+00> : vector<8x32xf32>
    %80 = tpu.matmul %78, %79, %cst_30 {dimension_numbers = #tpu.dot_dimension_numbers<[1], [0], [0], [1], [0, 0, 1, 1], [], []>} : vector<8x8xf32>, vector<8x32xf32>, vector<8x32xf32> -> vector<8x32xf32>
    %81 = arith.addf %58, %80 : vector<8x32xf32>
    %82 = vector.extract_strided_slice %9 {offsets = [0, 24], sizes = [8, 8], strides = [1, 1]} : vector<8x32xf32> to vector<8x8xf32>
    %83 = vector.extract_strided_slice %10 {offsets = [0, 24], sizes = [8, 8], strides = [1, 1]} : vector<8x32xf32> to vector<8x8xf32>
    %cst_31 = arith.constant dense<0.000000e+00> : vector<8x8xf32>
    %84 = tpu.matmul %82, %83, %cst_31 {dimension_numbers = #tpu.dot_dimension_numbers<[1], [1], [0], [0], [0, 0, 1, 0], [], []>} : vector<8x8xf32>, vector<8x8xf32>, vector<8x8xf32> -> vector<8x8xf32>
    %85 = tpu.iota {dimensions = array<i32: 0>} : vector<8x8xi32>
    %86 = tpu.iota {dimensions = array<i32: 1>} : vector<8x8xi32>
    %87 = arith.cmpi sge, %85, %86 : vector<8x8xi32>
    %cst_32 = arith.constant -1.000000e+30 : f32
    %88 = vector.broadcast %cst_32 : f32 to vector<8x8xf32>
    %89 = arith.select %87, %84, %88 : vector<8x8xi1>, vector<8x8xf32>
    %cst_33 = arith.constant dense<0xFF800000> : vector<8xf32>
    %90 = vector.multi_reduction <maximumf>, %89, %cst_33 [1] : vector<8x8xf32> to vector<8xf32>
    %91 = vector.shape_cast %90 : vector<8xf32> to vector<8x1xf32>
    %92 = vector.broadcast %91 : vector<8x1xf32> to vector<8x8xf32>
    %93 = arith.subf %89, %92 : vector<8x8xf32>
    %94 = math.exp %93 : vector<8x8xf32>
    %cst_34 = arith.constant dense<0.000000e+00> : vector<8xf32>
    %95 = vector.multi_reduction <add>, %94, %cst_34 [1] : vector<8x8xf32> to vector<8xf32>
    %96 = vector.shape_cast %95 : vector<8xf32> to vector<8x1xf32>
    %97 = tpu.reciprocal %96 {approx = true} : vector<8x1xf32> -> vector<8x1xf32>
    %98 = vector.broadcast %97 : vector<8x1xf32> to vector<8x8xf32>
    %99 = arith.mulf %94, %98 : vector<8x8xf32>
    %100 = vector.extract_strided_slice %11 {offsets = [0, 24], sizes = [8, 8], strides = [1, 1]} : vector<8x32xf32> to vector<8x8xf32>
    %cst_35 = arith.constant dense<0.000000e+00> : vector<8x8xf32>
    %101 = tpu.matmul %99, %100, %cst_35 {dimension_numbers = #tpu.dot_dimension_numbers<[1], [0], [0], [1], [0, 0, 1, 1], [], []>} : vector<8x8xf32>, vector<8x8xf32>, vector<8x8xf32> -> vector<8x8xf32>
    %102 = vector.extract_strided_slice %12 {offsets = [24, 0], sizes = [8, 32], strides = [1, 1]} : vector<32x32xf32> to vector<8x32xf32>
    %cst_36 = arith.constant dense<0.000000e+00> : vector<8x32xf32>
    %103 = tpu.matmul %101, %102, %cst_36 {dimension_numbers = #tpu.dot_dimension_numbers<[1], [0], [0], [1], [0, 0, 1, 1], [], []>} : vector<8x8xf32>, vector<8x32xf32>, vector<8x32xf32> -> vector<8x32xf32>
    %104 = arith.addf %81, %103 : vector<8x32xf32>
    %105 = vector.broadcast %13 : vector<1x32xf32> to vector<8x32xf32>
    %106 = arith.addf %104, %105 : vector<8x32xf32>
    %107 = arith.addf %1, %106 : vector<8x32xf32>
    %c0_37 = arith.constant 0 : index
    %c0_38 = arith.constant 0 : index
    %108 = vector.load %arg7[%c0_37, %c0_38] : memref<1x32xf32, #tpu.memory_space<vmem>>, vector<1x32xf32>
    %c0_39 = arith.constant 0 : index
    %c0_40 = arith.constant 0 : index
    %109 = vector.load %arg8[%c0_39, %c0_40] : memref<1x32xf32, #tpu.memory_space<vmem>>, vector<1x32xf32>
    %cst_41 = arith.constant dense<0.000000e+00> : vector<8xf32>
    %110 = vector.multi_reduction <add>, %107, %cst_41 [1] : vector<8x32xf32> to vector<8xf32>
    %111 = vector.shape_cast %110 : vector<8xf32> to vector<8x1xf32>
    %cst_42 = arith.constant 3.200000e+01 : f32
    %112 = vector.broadcast %cst_42 : f32 to vector<8x1xf32>
    %113 = arith.divf %111, %112 : vector<8x1xf32>
    %114 = vector.broadcast %113 : vector<8x1xf32> to vector<8x32xf32>
    %115 = arith.subf %107, %114 : vector<8x32xf32>
    %116 = arith.mulf %115, %115 : vector<8x32xf32>
    %cst_43 = arith.constant dense<0.000000e+00> : vector<8xf32>
    %117 = vector.multi_reduction <add>, %116, %cst_43 [1] : vector<8x32xf32> to vector<8xf32>
    %118 = vector.shape_cast %117 : vector<8xf32> to vector<8x1xf32>
    %cst_44 = arith.constant 3.200000e+01 : f32
    %119 = vector.broadcast %cst_44 : f32 to vector<8x1xf32>
    %120 = arith.divf %118, %119 : vector<8x1xf32>
    %121 = vector.broadcast %113 : vector<8x1xf32> to vector<8x32xf32>
    %122 = arith.subf %107, %121 : vector<8x32xf32>
    %cst_45 = arith.constant 9.99999974E-6 : f32
    %123 = vector.broadcast %cst_45 : f32 to vector<8x1xf32>
    %124 = arith.addf %120, %123 : vector<8x1xf32>
    %125 = math.rsqrt %124 : vector<8x1xf32>
    %126 = vector.broadcast %125 : vector<8x1xf32> to vector<8x32xf32>
    %127 = arith.mulf %122, %126 : vector<8x32xf32>
    %128 = vector.broadcast %108 : vector<1x32xf32> to vector<8x32xf32>
    %129 = arith.mulf %127, %128 : vector<8x32xf32>
    %130 = vector.broadcast %109 : vector<1x32xf32> to vector<8x32xf32>
    %131 = arith.addf %129, %130 : vector<8x32xf32>
    %c0_46 = arith.constant 0 : index
    %c0_47 = arith.constant 0 : index
    %132 = vector.load %arg9[%c0_46, %c0_47] : memref<32x32xf32, #tpu.memory_space<vmem>>, vector<32x32xf32>
    %cst_48 = arith.constant dense<0.000000e+00> : vector<8x32xf32>
    %133 = tpu.matmul %131, %132, %cst_48 {dimension_numbers = #tpu.dot_dimension_numbers<[1], [0], [0], [1], [0, 0, 1, 1], [], []>} : vector<8x32xf32>, vector<32x32xf32>, vector<8x32xf32> -> vector<8x32xf32>
    %c0_49 = arith.constant 0 : index
    %c0_50 = arith.constant 0 : index
    %134 = vector.load %arg10[%c0_49, %c0_50] : memref<1x32xf32, #tpu.memory_space<vmem>>, vector<1x32xf32>
    %135 = vector.broadcast %134 : vector<1x32xf32> to vector<8x32xf32>
    %136 = arith.addf %133, %135 : vector<8x32xf32>
    %c0_51 = arith.constant 0 : index
    %c0_52 = arith.constant 0 : index
    %137 = vector.load %arg11[%c0_51, %c0_52] : memref<32x64xf32, #tpu.memory_space<vmem>>, vector<32x64xf32>
    %cst_53 = arith.constant dense<0.000000e+00> : vector<8x64xf32>
    %138 = tpu.matmul %3, %137, %cst_53 {dimension_numbers = #tpu.dot_dimension_numbers<[1], [0], [0], [1], [0, 0, 1, 1], [], []>} : vector<8x32xf32>, vector<32x64xf32>, vector<8x64xf32> -> vector<8x64xf32>
    %c0_54 = arith.constant 0 : index
    %c0_55 = arith.constant 0 : index
    %139 = vector.load %arg12[%c0_54, %c0_55] : memref<1x64xf32, #tpu.memory_space<vmem>>, vector<1x64xf32>
    %140 = vector.broadcast %139 : vector<1x64xf32> to vector<8x64xf32>
    %141 = arith.addf %138, %140 : vector<8x64xf32>
    %142 = vector.extract_strided_slice %141 {offsets = [0, 0], sizes = [8, 32], strides = [1, 1]} : vector<8x64xf32> to vector<8x32xf32>
    %143 = vector.extract_strided_slice %141 {offsets = [0, 32], sizes = [8, 32], strides = [1, 1]} : vector<8x64xf32> to vector<8x32xf32>
    %c0_56 = arith.constant 0 : index
    %c0_57 = arith.constant 0 : index
    %144 = vector.load %arg13[%c0_56, %c0_57] : memref<32x32xf32, #tpu.memory_space<vmem>>, vector<32x32xf32>
    %c0_58 = arith.constant 0 : index
    %c0_59 = arith.constant 0 : index
    %145 = vector.load %arg14[%c0_58, %c0_59] : memref<1x32xf32, #tpu.memory_space<vmem>>, vector<1x32xf32>
    %146 = vector.extract_strided_slice %136 {offsets = [0, 0], sizes = [8, 8], strides = [1, 1]} : vector<8x32xf32> to vector<8x8xf32>
    %147 = vector.extract_strided_slice %142 {offsets = [0, 0], sizes = [8, 8], strides = [1, 1]} : vector<8x32xf32> to vector<8x8xf32>
    %cst_60 = arith.constant dense<0.000000e+00> : vector<8x8xf32>
    %148 = tpu.matmul %146, %147, %cst_60 {dimension_numbers = #tpu.dot_dimension_numbers<[1], [1], [0], [0], [0, 0, 1, 0], [], []>} : vector<8x8xf32>, vector<8x8xf32>, vector<8x8xf32> -> vector<8x8xf32>
    %cst_61 = arith.constant dense<0xFF800000> : vector<8xf32>
    %149 = vector.multi_reduction <maximumf>, %148, %cst_61 [1] : vector<8x8xf32> to vector<8xf32>
    %150 = vector.shape_cast %149 : vector<8xf32> to vector<8x1xf32>
    %151 = vector.broadcast %150 : vector<8x1xf32> to vector<8x8xf32>
    %152 = arith.subf %148, %151 : vector<8x8xf32>
    %153 = math.exp %152 : vector<8x8xf32>
    %cst_62 = arith.constant dense<0.000000e+00> : vector<8xf32>
    %154 = vector.multi_reduction <add>, %153, %cst_62 [1] : vector<8x8xf32> to vector<8xf32>
    %155 = vector.shape_cast %154 : vector<8xf32> to vector<8x1xf32>
    %156 = tpu.reciprocal %155 {approx = true} : vector<8x1xf32> -> vector<8x1xf32>
    %157 = vector.broadcast %156 : vector<8x1xf32> to vector<8x8xf32>
    %158 = arith.mulf %153, %157 : vector<8x8xf32>
    %159 = vector.extract_strided_slice %143 {offsets = [0, 0], sizes = [8, 8], strides = [1, 1]} : vector<8x32xf32> to vector<8x8xf32>
    %cst_63 = arith.constant dense<0.000000e+00> : vector<8x8xf32>
    %160 = tpu.matmul %158, %159, %cst_63 {dimension_numbers = #tpu.dot_dimension_numbers<[1], [0], [0], [1], [0, 0, 1, 1], [], []>} : vector<8x8xf32>, vector<8x8xf32>, vector<8x8xf32> -> vector<8x8xf32>
    %161 = vector.extract_strided_slice %144 {offsets = [0, 0], sizes = [8, 32], strides = [1, 1]} : vector<32x32xf32> to vector<8x32xf32>
    %cst_64 = arith.constant dense<0.000000e+00> : vector<8x32xf32>
    %162 = tpu.matmul %160, %161, %cst_64 {dimension_numbers = #tpu.dot_dimension_numbers<[1], [0], [0], [1], [0, 0, 1, 1], [], []>} : vector<8x8xf32>, vector<8x32xf32>, vector<8x32xf32> -> vector<8x32xf32>
    %163 = vector.extract_strided_slice %136 {offsets = [0, 8], sizes = [8, 8], strides = [1, 1]} : vector<8x32xf32> to vector<8x8xf32>
    %164 = vector.extract_strided_slice %142 {offsets = [0, 8], sizes = [8, 8], strides = [1, 1]} : vector<8x32xf32> to vector<8x8xf32>
    %cst_65 = arith.constant dense<0.000000e+00> : vector<8x8xf32>
    %165 = tpu.matmul %163, %164, %cst_65 {dimension_numbers = #tpu.dot_dimension_numbers<[1], [1], [0], [0], [0, 0, 1, 0], [], []>} : vector<8x8xf32>, vector<8x8xf32>, vector<8x8xf32> -> vector<8x8xf32>
    %cst_66 = arith.constant dense<0xFF800000> : vector<8xf32>
    %166 = vector.multi_reduction <maximumf>, %165, %cst_66 [1] : vector<8x8xf32> to vector<8xf32>
    %167 = vector.shape_cast %166 : vector<8xf32> to vector<8x1xf32>
    %168 = vector.broadcast %167 : vector<8x1xf32> to vector<8x8xf32>
    %169 = arith.subf %165, %168 : vector<8x8xf32>
    %170 = math.exp %169 : vector<8x8xf32>
    %cst_67 = arith.constant dense<0.000000e+00> : vector<8xf32>
    %171 = vector.multi_reduction <add>, %170, %cst_67 [1] : vector<8x8xf32> to vector<8xf32>
    %172 = vector.shape_cast %171 : vector<8xf32> to vector<8x1xf32>
    %173 = tpu.reciprocal %172 {approx = true} : vector<8x1xf32> -> vector<8x1xf32>
    %174 = vector.broadcast %173 : vector<8x1xf32> to vector<8x8xf32>
    %175 = arith.mulf %170, %174 : vector<8x8xf32>
    %176 = vector.extract_strided_slice %143 {offsets = [0, 8], sizes = [8, 8], strides = [1, 1]} : vector<8x32xf32> to vector<8x8xf32>
    %cst_68 = arith.constant dense<0.000000e+00> : vector<8x8xf32>
    %177 = tpu.matmul %175, %176, %cst_68 {dimension_numbers = #tpu.dot_dimension_numbers<[1], [0], [0], [1], [0, 0, 1, 1], [], []>} : vector<8x8xf32>, vector<8x8xf32>, vector<8x8xf32> -> vector<8x8xf32>
    %178 = vector.extract_strided_slice %144 {offsets = [8, 0], sizes = [8, 32], strides = [1, 1]} : vector<32x32xf32> to vector<8x32xf32>
    %cst_69 = arith.constant dense<0.000000e+00> : vector<8x32xf32>
    %179 = tpu.matmul %177, %178, %cst_69 {dimension_numbers = #tpu.dot_dimension_numbers<[1], [0], [0], [1], [0, 0, 1, 1], [], []>} : vector<8x8xf32>, vector<8x32xf32>, vector<8x32xf32> -> vector<8x32xf32>
    %180 = arith.addf %162, %179 : vector<8x32xf32>
    %181 = vector.extract_strided_slice %136 {offsets = [0, 16], sizes = [8, 8], strides = [1, 1]} : vector<8x32xf32> to vector<8x8xf32>
    %182 = vector.extract_strided_slice %142 {offsets = [0, 16], sizes = [8, 8], strides = [1, 1]} : vector<8x32xf32> to vector<8x8xf32>
    %cst_70 = arith.constant dense<0.000000e+00> : vector<8x8xf32>
    %183 = tpu.matmul %181, %182, %cst_70 {dimension_numbers = #tpu.dot_dimension_numbers<[1], [1], [0], [0], [0, 0, 1, 0], [], []>} : vector<8x8xf32>, vector<8x8xf32>, vector<8x8xf32> -> vector<8x8xf32>
    %cst_71 = arith.constant dense<0xFF800000> : vector<8xf32>
    %184 = vector.multi_reduction <maximumf>, %183, %cst_71 [1] : vector<8x8xf32> to vector<8xf32>
    %185 = vector.shape_cast %184 : vector<8xf32> to vector<8x1xf32>
    %186 = vector.broadcast %185 : vector<8x1xf32> to vector<8x8xf32>
    %187 = arith.subf %183, %186 : vector<8x8xf32>
    %188 = math.exp %187 : vector<8x8xf32>
    %cst_72 = arith.constant dense<0.000000e+00> : vector<8xf32>
    %189 = vector.multi_reduction <add>, %188, %cst_72 [1] : vector<8x8xf32> to vector<8xf32>
    %190 = vector.shape_cast %189 : vector<8xf32> to vector<8x1xf32>
    %191 = tpu.reciprocal %190 {approx = true} : vector<8x1xf32> -> vector<8x1xf32>
    %192 = vector.broadcast %191 : vector<8x1xf32> to vector<8x8xf32>
    %193 = arith.mulf %188, %192 : vector<8x8xf32>
    %194 = vector.extract_strided_slice %143 {offsets = [0, 16], sizes = [8, 8], strides = [1, 1]} : vector<8x32xf32> to vector<8x8xf32>
    %cst_73 = arith.constant dense<0.000000e+00> : vector<8x8xf32>
    %195 = tpu.matmul %193, %194, %cst_73 {dimension_numbers = #tpu.dot_dimension_numbers<[1], [0], [0], [1], [0, 0, 1, 1], [], []>} : vector<8x8xf32>, vector<8x8xf32>, vector<8x8xf32> -> vector<8x8xf32>
    %196 = vector.extract_strided_slice %144 {offsets = [16, 0], sizes = [8, 32], strides = [1, 1]} : vector<32x32xf32> to vector<8x32xf32>
    %cst_74 = arith.constant dense<0.000000e+00> : vector<8x32xf32>
    %197 = tpu.matmul %195, %196, %cst_74 {dimension_numbers = #tpu.dot_dimension_numbers<[1], [0], [0], [1], [0, 0, 1, 1], [], []>} : vector<8x8xf32>, vector<8x32xf32>, vector<8x32xf32> -> vector<8x32xf32>
    %198 = arith.addf %180, %197 : vector<8x32xf32>
    %199 = vector.extract_strided_slice %136 {offsets = [0, 24], sizes = [8, 8], strides = [1, 1]} : vector<8x32xf32> to vector<8x8xf32>
    %200 = vector.extract_strided_slice %142 {offsets = [0, 24], sizes = [8, 8], strides = [1, 1]} : vector<8x32xf32> to vector<8x8xf32>
    %cst_75 = arith.constant dense<0.000000e+00> : vector<8x8xf32>
    %201 = tpu.matmul %199, %200, %cst_75 {dimension_numbers = #tpu.dot_dimension_numbers<[1], [1], [0], [0], [0, 0, 1, 0], [], []>} : vector<8x8xf32>, vector<8x8xf32>, vector<8x8xf32> -> vector<8x8xf32>
    %cst_76 = arith.constant dense<0xFF800000> : vector<8xf32>
    %202 = vector.multi_reduction <maximumf>, %201, %cst_76 [1] : vector<8x8xf32> to vector<8xf32>
    %203 = vector.shape_cast %202 : vector<8xf32> to vector<8x1xf32>
    %204 = vector.broadcast %203 : vector<8x1xf32> to vector<8x8xf32>
    %205 = arith.subf %201, %204 : vector<8x8xf32>
    %206 = math.exp %205 : vector<8x8xf32>
    %cst_77 = arith.constant dense<0.000000e+00> : vector<8xf32>
    %207 = vector.multi_reduction <add>, %206, %cst_77 [1] : vector<8x8xf32> to vector<8xf32>
    %208 = vector.shape_cast %207 : vector<8xf32> to vector<8x1xf32>
    %209 = tpu.reciprocal %208 {approx = true} : vector<8x1xf32> -> vector<8x1xf32>
    %210 = vector.broadcast %209 : vector<8x1xf32> to vector<8x8xf32>
    %211 = arith.mulf %206, %210 : vector<8x8xf32>
    %212 = vector.extract_strided_slice %143 {offsets = [0, 24], sizes = [8, 8], strides = [1, 1]} : vector<8x32xf32> to vector<8x8xf32>
    %cst_78 = arith.constant dense<0.000000e+00> : vector<8x8xf32>
    %213 = tpu.matmul %211, %212, %cst_78 {dimension_numbers = #tpu.dot_dimension_numbers<[1], [0], [0], [1], [0, 0, 1, 1], [], []>} : vector<8x8xf32>, vector<8x8xf32>, vector<8x8xf32> -> vector<8x8xf32>
    %214 = vector.extract_strided_slice %144 {offsets = [24, 0], sizes = [8, 32], strides = [1, 1]} : vector<32x32xf32> to vector<8x32xf32>
    %cst_79 = arith.constant dense<0.000000e+00> : vector<8x32xf32>
    %215 = tpu.matmul %213, %214, %cst_79 {dimension_numbers = #tpu.dot_dimension_numbers<[1], [0], [0], [1], [0, 0, 1, 1], [], []>} : vector<8x8xf32>, vector<8x32xf32>, vector<8x32xf32> -> vector<8x32xf32>
    %216 = arith.addf %198, %215 : vector<8x32xf32>
    %217 = vector.broadcast %145 : vector<1x32xf32> to vector<8x32xf32>
    %218 = arith.addf %216, %217 : vector<8x32xf32>
    %219 = arith.addf %131, %218 : vector<8x32xf32>
    %c0_80 = arith.constant 0 : index
    %c0_81 = arith.constant 0 : index
    %220 = vector.load %arg15[%c0_80, %c0_81] : memref<1x32xf32, #tpu.memory_space<vmem>>, vector<1x32xf32>
    %c0_82 = arith.constant 0 : index
    %c0_83 = arith.constant 0 : index
    %221 = vector.load %arg16[%c0_82, %c0_83] : memref<1x32xf32, #tpu.memory_space<vmem>>, vector<1x32xf32>
    %cst_84 = arith.constant dense<0.000000e+00> : vector<8xf32>
    %222 = vector.multi_reduction <add>, %219, %cst_84 [1] : vector<8x32xf32> to vector<8xf32>
    %223 = vector.shape_cast %222 : vector<8xf32> to vector<8x1xf32>
    %cst_85 = arith.constant 3.200000e+01 : f32
    %224 = vector.broadcast %cst_85 : f32 to vector<8x1xf32>
    %225 = arith.divf %223, %224 : vector<8x1xf32>
    %226 = vector.broadcast %225 : vector<8x1xf32> to vector<8x32xf32>
    %227 = arith.subf %219, %226 : vector<8x32xf32>
    %228 = arith.mulf %227, %227 : vector<8x32xf32>
    %cst_86 = arith.constant dense<0.000000e+00> : vector<8xf32>
    %229 = vector.multi_reduction <add>, %228, %cst_86 [1] : vector<8x32xf32> to vector<8xf32>
    %230 = vector.shape_cast %229 : vector<8xf32> to vector<8x1xf32>
    %cst_87 = arith.constant 3.200000e+01 : f32
    %231 = vector.broadcast %cst_87 : f32 to vector<8x1xf32>
    %232 = arith.divf %230, %231 : vector<8x1xf32>
    %233 = vector.broadcast %225 : vector<8x1xf32> to vector<8x32xf32>
    %234 = arith.subf %219, %233 : vector<8x32xf32>
    %cst_88 = arith.constant 9.99999974E-6 : f32
    %235 = vector.broadcast %cst_88 : f32 to vector<8x1xf32>
    %236 = arith.addf %232, %235 : vector<8x1xf32>
    %237 = math.rsqrt %236 : vector<8x1xf32>
    %238 = vector.broadcast %237 : vector<8x1xf32> to vector<8x32xf32>
    %239 = arith.mulf %234, %238 : vector<8x32xf32>
    %240 = vector.broadcast %220 : vector<1x32xf32> to vector<8x32xf32>
    %241 = arith.mulf %239, %240 : vector<8x32xf32>
    %242 = vector.broadcast %221 : vector<1x32xf32> to vector<8x32xf32>
    %243 = arith.addf %241, %242 : vector<8x32xf32>
    %c0_89 = arith.constant 0 : index
    %c0_90 = arith.constant 0 : index
    %244 = vector.load %arg17[%c0_89, %c0_90] : memref<32x64xf32, #tpu.memory_space<vmem>>, vector<32x64xf32>
    %cst_91 = arith.constant dense<0.000000e+00> : vector<8x64xf32>
    %245 = tpu.matmul %243, %244, %cst_91 {dimension_numbers = #tpu.dot_dimension_numbers<[1], [0], [0], [1], [0, 0, 1, 1], [], []>} : vector<8x32xf32>, vector<32x64xf32>, vector<8x64xf32> -> vector<8x64xf32>
    %c0_92 = arith.constant 0 : index
    %c0_93 = arith.constant 0 : index
    %246 = vector.load %arg18[%c0_92, %c0_93] : memref<1x64xf32, #tpu.memory_space<vmem>>, vector<1x64xf32>
    %247 = vector.broadcast %246 : vector<1x64xf32> to vector<8x64xf32>
    %248 = arith.addf %245, %247 : vector<8x64xf32>
    %cst_94 = arith.constant 0.000000e+00 : f32
    %249 = vector.broadcast %cst_94 : f32 to vector<8x64xf32>
    %250 = arith.maximumf %248, %249 : vector<8x64xf32>
    %c0_95 = arith.constant 0 : index
    %c0_96 = arith.constant 0 : index
    %251 = vector.load %arg19[%c0_95, %c0_96] : memref<64x32xf32, #tpu.memory_space<vmem>>, vector<64x32xf32>
    %cst_97 = arith.constant dense<0.000000e+00> : vector<8x32xf32>
    %252 = tpu.matmul %250, %251, %cst_97 {dimension_numbers = #tpu.dot_dimension_numbers<[1], [0], [0], [1], [0, 0, 1, 1], [], []>} : vector<8x64xf32>, vector<64x32xf32>, vector<8x32xf32> -> vector<8x32xf32>
    %c0_98 = arith.constant 0 : index
    %c0_99 = arith.constant 0 : index
    %253 = vector.load %arg20[%c0_98, %c0_99] : memref<1x32xf32, #tpu.memory_space<vmem>>, vector<1x32xf32>
    %254 = vector.broadcast %253 : vector<1x32xf32> to vector<8x32xf32>
    %255 = arith.addf %252, %254 : vector<8x32xf32>
    %256 = arith.addf %243, %255 : vector<8x32xf32>
    %c0_100 = arith.constant 0 : index
    %c0_101 = arith.constant 0 : index
    %257 = vector.load %arg21[%c0_100, %c0_101] : memref<1x32xf32, #tpu.memory_space<vmem>>, vector<1x32xf32>
    %c0_102 = arith.constant 0 : index
    %c0_103 = arith.constant 0 : index
    %258 = vector.load %arg22[%c0_102, %c0_103] : memref<1x32xf32, #tpu.memory_space<vmem>>, vector<1x32xf32>
    %cst_104 = arith.constant dense<0.000000e+00> : vector<8xf32>
    %259 = vector.multi_reduction <add>, %256, %cst_104 [1] : vector<8x32xf32> to vector<8xf32>
    %260 = vector.shape_cast %259 : vector<8xf32> to vector<8x1xf32>
    %cst_105 = arith.constant 3.200000e+01 : f32
    %261 = vector.broadcast %cst_105 : f32 to vector<8x1xf32>
    %262 = arith.divf %260, %261 : vector<8x1xf32>
    %263 = vector.broadcast %262 : vector<8x1xf32> to vector<8x32xf32>
    %264 = arith.subf %256, %263 : vector<8x32xf32>
    %265 = arith.mulf %264, %264 : vector<8x32xf32>
    %cst_106 = arith.constant dense<0.000000e+00> : vector<8xf32>
    %266 = vector.multi_reduction <add>, %265, %cst_106 [1] : vector<8x32xf32> to vector<8xf32>
    %267 = vector.shape_cast %266 : vector<8xf32> to vector<8x1xf32>
    %cst_107 = arith.constant 3.200000e+01 : f32
    %268 = vector.broadcast %cst_107 : f32 to vector<8x1xf32>
    %269 = arith.divf %267, %268 : vector<8x1xf32>
    %270 = vector.broadcast %262 : vector<8x1xf32> to vector<8x32xf32>
    %271 = arith.subf %256, %270 : vector<8x32xf32>
    %cst_108 = arith.constant 9.99999974E-6 : f32
    %272 = vector.broadcast %cst_108 : f32 to vector<8x1xf32>
    %273 = arith.addf %269, %272 : vector<8x1xf32>
    %274 = math.rsqrt %273 : vector<8x1xf32>
    %275 = vector.broadcast %274 : vector<8x1xf32> to vector<8x32xf32>
    %276 = arith.mulf %271, %275 : vector<8x32xf32>
    %277 = vector.broadcast %257 : vector<1x32xf32> to vector<8x32xf32>
    %278 = arith.mulf %276, %277 : vector<8x32xf32>
    %279 = vector.broadcast %258 : vector<1x32xf32> to vector<8x32xf32>
    %280 = arith.addf %278, %279 : vector<8x32xf32>
    %c0_109 = arith.constant 0 : index
    %c0_110 = arith.constant 0 : index
    %c0_111 = arith.constant 0 : index
    %281 = vector.load %arg23[%c0_109, %c0_110, %c0_111] : memref<1x8x32xf32, #tpu.memory_space<vmem>>, vector<1x8x32xf32>
    %282 = vector.shape_cast %281 : vector<1x8x32xf32> to vector<8x32xf32>
    %283 = vector.shape_cast %280 : vector<8x32xf32> to vector<1x8x32xf32>
    tpu.vector_store %arg23[%c0_109, %c0_110, %c0_111], %283 {strides = array<i32>} : memref<1x8x32xf32, #tpu.memory_space<vmem>>, vector<1x8x32xf32>,
    return
  }
  func.func @transform_0(%arg0: i32) -> (i32, i32, i32) {
    %c0_i32 = arith.constant 0 : i32
    %c0_i32_0 = arith.constant 0 : i32
    %c0_i32_1 = arith.constant 0 : i32
    return %arg0, %c0_i32, %c0_i32_0 : i32, i32, i32
  }
  func.func @transform_1(%arg0: i32) -> (i32, i32, i32) {
    %c0_i32 = arith.constant 0 : i32
    %c0_i32_0 = arith.constant 0 : i32
    %c0_i32_1 = arith.constant 0 : i32
    return %arg0, %c0_i32, %c0_i32_0 : i32, i32, i32
  }
  func.func @transform_2(%arg0: i32) -> (i32, i32) {
    %c0_i32 = arith.constant 0 : i32
    %c0_i32_0 = arith.constant 0 : i32
    %c0_i32_1 = arith.constant 0 : i32
    return %c0_i32, %c0_i32_0 : i32, i32
  }
  func.func @transform_3(%arg0: i32) -> (i32, i32) {
    %c0_i32 = arith.constant 0 : i32
    %c0_i32_0 = arith.constant 0 : i32
    %c0_i32_1 = arith.constant 0 : i32
    return %c0_i32, %c0_i32_0 : i32, i32
  }
  func.func @transform_4(%arg0: i32) -> (i32, i32) {
    %c0_i32 = arith.constant 0 : i32
    %c0_i32_0 = arith.constant 0 : i32
    %c0_i32_1 = arith.constant 0 : i32
    return %c0_i32, %c0_i32_0 : i32, i32
  }
  func.func @transform_5(%arg0: i32) -> (i32, i32) {
    %c0_i32 = arith.constant 0 : i32
    %c0_i32_0 = arith.constant 0 : i32
    %c0_i32_1 = arith.constant 0 : i32
    return %c0_i32, %c0_i32_0 : i32, i32
  }
  func.func @transform_6(%arg0: i32) -> (i32, i32) {
    %c0_i32 = arith.constant 0 : i32
    %c0_i32_0 = arith.constant 0 : i32
    %c0_i32_1 = arith.constant 0 : i32
    return %c0_i32, %c0_i32_0 : i32, i32
  }
  func.func @transform_7(%arg0: i32) -> (i32, i32) {
    %c0_i32 = arith.constant 0 : i32
    %c0_i32_0 = arith.constant 0 : i32
    %c0_i32_1 = arith.constant 0 : i32
    return %c0_i32, %c0_i32_0 : i32, i32
  }
  func.func @transform_8(%arg0: i32) -> (i32, i32) {
    %c0_i32 = arith.constant 0 : i32
    %c0_i32_0 = arith.constant 0 : i32
    %c0_i32_1 = arith.constant 0 : i32
    return %c0_i32, %c0_i32_0 : i32, i32
  }
  func.func @transform_9(%arg0: i32) -> (i32, i32) {
    %c0_i32 = arith.constant 0 : i32
    %c0_i32_0 = arith.constant 0 : i32
    %c0_i32_1 = arith.constant 0 : i32
    return %c0_i32, %c0_i32_0 : i32, i32
  }
  func.func @transform_10(%arg0: i32) -> (i32, i32) {
    %c0_i32 = arith.constant 0 : i32
    %c0_i32_0 = arith.constant 0 : i32
    %c0_i32_1 = arith.constant 0 : i32
    return %c0_i32, %c0_i32_0 : i32, i32
  }
  func.func @transform_11(%arg0: i32) -> (i32, i32) {
    %c0_i32 = arith.constant 0 : i32
    %c0_i32_0 = arith.constant 0 : i32
    %c0_i32_1 = arith.constant 0 : i32
    return %c0_i32, %c0_i32_0 : i32, i32
  }
  func.func @transform_12(%arg0: i32) -> (i32, i32) {
    %c0_i32 = arith.constant 0 : i32
    %c0_i32_0 = arith.constant 0 : i32
    %c0_i32_1 = arith.constant 0 : i32
    return %c0_i32, %c0_i32_0 : i32, i32
  }
  func.func @transform_13(%arg0: i32) -> (i32, i32) {
    %c0_i32 = arith.constant 0 : i32
    %c0_i32_0 = arith.constant 0 : i32
    %c0_i32_1 = arith.constant 0 : i32
    return %c0_i32, %c0_i32_0 : i32, i32
  }
  func.func @transform_14(%arg0: i32) -> (i32, i32) {
    %c0_i32 = arith.constant 0 : i32
    %c0_i32_0 = arith.constant 0 : i32
    %c0_i32_1 = arith.constant 0 : i32
    return %c0_i32, %c0_i32_0 : i32, i32
  }
  func.func @transform_15(%arg0: i32) -> (i32, i32) {
    %c0_i32 = arith.constant 0 : i32
    %c0_i32_0 = arith.constant 0 : i32
    %c0_i32_1 = arith.constant 0 : i32
    return %c0_i32, %c0_i32_0 : i32, i32
  }
  func.func @transform_16(%arg0: i32) -> (i32, i32) {
    %c0_i32 = arith.constant 0 : i32
    %c0_i32_0 = arith.constant 0 : i32
    %c0_i32_1 = arith.constant 0 : i32
    return %c0_i32, %c0_i32_0 : i32, i32
  }
  func.func @transform_17(%arg0: i32) -> (i32, i32) {
    %c0_i32 = arith.constant 0 : i32
    %c0_i32_0 = arith.constant 0 : i32
    %c0_i32_1 = arith.constant 0 : i32
    return %c0_i32, %c0_i32_0 : i32, i32
  }
  func.func @transform_18(%arg0: i32) -> (i32, i32) {
    %c0_i32 = arith.constant 0 : i32
    %c0_i32_0 = arith.constant 0 : i32
    %c0_i32_1 = arith.constant 0 : i32
    return %c0_i32, %c0_i32_0 : i32, i32
  }
  func.func @transform_19(%arg0: i32) -> (i32, i32) {
    %c0_i32 = arith.constant 0 : i32
    %c0_i32_0 = arith.constant 0 : i32
    %c0_i32_1 = arith.constant 0 : i32
    return %c0_i32, %c0_i32_0 : i32, i32
  }
  func.func @transform_20(%arg0: i32) -> (i32, i32) {
    %c0_i32 = arith.constant 0 : i32
    %c0_i32_0 = arith.constant 0 : i32
    %c0_i32_1 = arith.constant 0 : i32
    return %c0_i32, %c0_i32_0 : i32, i32
  }
  func.func @transform_21(%arg0: i32) -> (i32, i32) {
    %c0_i32 = arith.constant 0 : i32
    %c0_i32_0 = arith.constant 0 : i32
    %c0_i32_1 = arith.constant 0 : i32
    return %c0_i32, %c0_i32_0 : i32, i32
  }
  func.func @transform_22(%arg0: i32) -> (i32, i32, i32) {
    %c0_i32 = arith.constant 0 : i32
    %c0_i32_0 = arith.constant 0 : i32
    %c0_i32_1 = arith.constant 0 : i32
    return %arg0, %c0_i32, %c0_i32_0 : i32, i32, i32
  }
}

</mosaic_0001>

<bundles_post_ra>
// kernel: _lambda_.9
= control target key start
LH: loop header
LB: loop body
LE: loop exit
PB: predicated region body
PF: predicated region fallthrough
CT: control target
= control target key end

     0   :  { %vm27_vm0 = vcmask 261120   ;;  %s190_s1 = inlined_call_operand.vmem [shape: f32[32,128], index: 1, kind: input, shape index: {}]   ;;  %s191_s0 = inlined_call_operand.vmem [shape: f32[16,32], index: 0, kind: input, shape index: {}]   ;;  %s192_s2 = inlined_call_operand.vmem [shape: f32[1,128], index: 2, kind: input, shape index: {}]   ;;  %s193_s3 = inlined_call_operand.vmem [shape: f32[16,128], index: 3, kind: output, shape index: {}]  }
   0x1   :  { %v16_v0 = vld [vmem:[%s190_s1] sm:$0xff]  ;;  %v17_v1 = vld [vmem:[%s190_s1 + $0x8] sm:$0xff]  ;;  %v18_v2 = vld [vmem:[%s190_s1 + $0x10] sm:$0xff] }
   0x2   :  { %v135_v3 = vpack.c.bf16 %v17_v1, %v16_v0  ;;  %v19_v4 = vld [vmem:[%s190_s1 + $0x18] sm:$0xff]  ;;  %v14_v5 = vld [vmem:[%s191_s0] sm:$0xff]  ;;  %v15_v7 = vld [vmem:[%s191_s0 + $0x8] sm:$0xff] }
   0x3   :  { %v139_v6 = vpack.c.bf16 %v19_v4, %v18_v2  ;;  %132 = vmatprep.mubr.msk.f32.mxu0 %vm27_vm0, %v14_v5  ;;  %v115_v8 = vld [vmem:[%s192_s2] ss:$0 sm:$0xff] }
   0x4   :  { %136 = vmatprep.subr.bf16.mxu0 %v135_v3 }
   0x5   :  { %138 = vmatpush3.bf16.msra.mxu0 %v135_v3 }
   0x6   :  { %140 = vmatprep.subr.bf16.mxu0 %v139_v6 }
   0x9   :  { %142 = vmatpush3.bf16.msra.mxu0 %v139_v6 }
   0xc   :  { %133 = vmatmul.mubr.msk.f32.vlgmr.msra.gmra.mrb[0].mxu0 %vm27_vm0, %v15_v7 }
  0xdf   :  { %v134_v9 = vpop.f32.mrb[0].mxu0 }
  0xe0   :  { %v106_v10 = vadd.f32 %v134_v9, %v115_v8  ;;  %v100_v11 = vpop.f32.mrb[1].mxu0 }
  0xe1   :  { %v101_v12 = vadd.f32 %v115_v8, %v100_v11 }
  0xe2   :  { %110 = vst [vmem:[%s193_s3 + $0x8] sm:$0xff] %v106_v10 }
  0xe3   :  { %109 = vst [vmem:[%s193_s3] sm:$0xff] %v101_v12 }

// kernel: _lambda_.5
= control target key start
LH: loop header
LB: loop body
LE: loop exit
PB: predicated region body
PF: predicated region fallthrough
CT: control target
= control target key end

     0   :  { %s2115_s25 = smov 0   ;;  %s2322_s0 = inlined_call_operand.vmem [shape: f32[2,8,32], index: 0, kind: input, shape index: {}, may-alias: {0,13}]   ;;  %s2323_s1 = inlined_call_operand.vmem [shape: f32[32,96], index: 1, kind: input, shape index: {}]   ;;  %s2324_s2 = inlined_call_operand.vmem [shape: f32[1,96], index: 2, kind: input, shape index: {}]   ;;  %s2325_s3 = inlined_call_operand.vmem [shape: f32[32,32], index: 3, kind: input, shape index: {}]   ;;  %s2326_s4 = inlined_call_operand.vmem [shape: f32[1,32], index: 4, kind: input, shape index: {}]   ;;  %s2327_s5 = inlined_call_operand.vmem [shape: f32[1,32], index: 5, kind: input, shape index: {}, may-alias: {5,11}]   ;;  %s2328_s6 = inlined_call_operand.vmem [shape: f32[1,32], index: 6, kind: input, shape index: {}, may-alias: {6,12}]   ;;  %s2329_s7 = inlined_call_operand.vmem [shape: f32[32,64], index: 7, kind: input, shape index: {}]   ;;  %s2330_s8 = inlined_call_operand.vmem [shape: f32[1,64], index: 8, kind: input, shape index: {}]   ;;  %s2331_s9 = inlined_call_operand.vmem [shape: f32[64,32], index: 9, kind: input, shape index: {}]   ;;  %s2332_s10 = inlined_call_operand.vmem [shape: f32[1,32], index: 10, kind: input, shape index: {}]   ;;  %s2333_s11 = inlined_call_operand.vmem [shape: f32[1,32], index: 11, kind: input, shape index: {}, may-alias: {5,11}]   ;;  %s2334_s12 = inlined_call_operand.vmem [shape: f32[1,32], index: 12, kind: input, shape index: {}, may-alias: {6,12}]   ;;  %s2335_s13 = inlined_call_operand.vmem [shape: f32[2,8,32], index: 13, kind: output, shape index: {}, may-alias: {0,13}]  }
   0x1 LB: > { %s1777_s26 = sadd.s32 4294967295, %s2029_s25   ;;  %p1781_p0 = scmp.ge.s32.totalorder %s2029_s25, 1  ;;  %s2029_s25 = sphi %s2115_s25, %s23_s25  }
   0x2   : > { %p386_p1 = scmp.lt.s32.totalorder %s2029_s25, 3 }
   0x4   : > { %p387_p2 = pnand %p1781_p0, %p386_p1 }
   0x5   : > { %v437_v0 = vld [vmem:[%s2323_s1] sm:$0xff] (!%p387_p2)  ;;  %v438_v1 = vld [vmem:[%s2323_s1 + $0x8] sm:$0xff] (!%p387_p2)  ;;  %v439_v2 = vld [vmem:[%s2323_s1 + $0x10] sm:$0xff] (!%p387_p2)  ;;  %v2031_v3 = vmov (!%p387_p2), 0.0|0.0   ;;  %vm2032_vm0 = vmmov (!%p387_p2), 0   ;;  %v2033_v6 = vmov (!%p387_p2), 0.0  }
   0x6   : > { %390 = sbr.rel (%p387_p2) target bundleno = 3640 (0xe38), region = 72  ;;  %1957 = vmatprep.subr.bf16.mxu0 (!%p387_p2), %v2031_v3  ;;  %v1958_v4 = vpack.c.bf16 (!%p387_p2), %v438_v1, %v437_v0  ;;  %v440_v5 = vld [vmem:[%s2323_s1 + $0x18] sm:$0xff] (!%p387_p2)  ;;  %1864 = vmatprep.mubr.msk.f32.mxu0 (!%p387_p2), %vm2032_vm0, %v2033_v6  ;;  %p428_p3 = scmp.lt.s32.totalorder (!%p387_p2), %s1777_s26, 1  ;;  %vm448_vm1 = vcmask (!%p387_p2), 261120   ;;  %v1784_v9 = vld [vmem:[%s2324_s2] ss:$0 sm:$0xff] (!%p387_p2) }
   0x7   : > { %1872 = vmatprep.subr.mxu1 (!%p387_p2), %v2033_v6  ;;  %1874 = vmatprep.mubr.msk.f32.mxu1 (!%p387_p2), %vm2032_vm0, %v2033_v6  ;;  %v1961_v7 = vpack.c.bf16 (!%p387_p2), %v440_v5, %v439_v2  ;;  %s2034_s24 = smov (!%p387_p2), 120   ;;  %s2035_s27 = smov (!%p387_p2), 96   ;;  %vm530_vm2 = vcmask (!%p387_p2), 64512   ;;  %v523_v32 = vld [vmem:[%s2325_s3 + $0x8] sm:$0xff] (!%p387_p2)  ;;  %v522_v41 = vld [vmem:[%s2325_s3] sm:$0xff] (!%p387_p2)  ;;  %vm1619_vm3 = vcmask (!%p387_p2), 523264  }
   0x8   : > { %1959 = vmatpush3.bf16.msra.mxu0 (!%p387_p2), %v1958_v4  ;;  %s2036_s28 = smov (!%p387_p2), 88   ;;  %s2037_s29 = smov (!%p387_p2), 56   ;;  %v524_v4 = vld [vmem:[%s2325_s3 + $0x10] sm:$0xff] (!%p387_p2) }
   0x9   : > { %1960 = vmatprep.subr.bf16.mxu0 (!%p387_p2), %v2031_v3  ;;  %s2038_s30 = smov (!%p387_p2), 64   ;;  %s2039_s14 = smov (!%p387_p2), 80  }
   0xa   : > { %s2040_s15 = smov (!%p387_p2), 112   ;;  %s2042_s22 = smov (!%p387_p2), 104  }
   0xb   : > { %s2043_s23 = smov (!%p387_p2), 48  }
   0xc   : > { %1962 = vmatpush3.bf16.msra.mxu0 (!%p387_p2), %v1961_v7 }
   0xd   : > { %s2337_s26 = smov (!%p428_p3, %s1777_s26), 1  ;;  %1867 = vmatprep.subr.mxu0 %v2033_v6 }
   0xe   : > { %s1782_s18 = sshll.u32 %s2337_s26, 3 }
   0xf   : > { %s431_s21 = scalar_lea.vmem %s2322_s0, %s1782_s18 }
  0x10   : > { %v2150_v8 = vld [vmem:[%s431_s21] sm:$0xff]  ;;  %s2041_s21 = smov 72  }
  0x11   : > { %1865 = vmatmul.mubr.msk.f32.vlgmr.msra.gmra.mrb[0].mxu0 %vm448_vm1, %v2150_v8 }
  0x12   : > { %1869 = vmatprep.mubr.msk.f32.mxu0 %vm2032_vm0, %v2033_v6 }
  0xe4   : > { %v518_v10 = vpop.f32.mrb[0].mxu0 }
  0xe5   : > { %v2160_v11 = vadd.f32 %v1784_v9, %v518_v10  ;;  %v1866_v12 = vpop.f32.mrb[1].mxu0 }
  0xe7   : > { %692 = vrot.lane.b32.xlu1 %v2160_v11, %s2034_s24  ;;  %528 = vrot.lane.b32.xlu0 %v2160_v11, %s2035_s27 }
  0xeb   : > { %694 = vrot.lane.b32.xlu0 %v2160_v11, %s2036_s28  ;;  %s2044_s28 = smov 40  }
 0x159   : > { %v529_v13 = vpop.permute.xlu0 %528  ;;  %v693_v15 = vpop.permute.xlu1 %692 }
 0x15a   : > { %1868 = vmatpush3.xpose.msk.msra.mxu0 %vm530_vm2, %v529_v13 }
 0x15b   : > { %1877 = vmatprep.subr.mxu0 %v2033_v6 }
 0x15d   : > { %1870 = vmatmul.mubr.msk.f32.vlgmr.msra.gmra.mrb[2].mxu0 %vm530_vm2, %v2160_v11  ;;  %v695_v14 = vpop.permute.xlu0 %694 }
 0x15e   : > { %1878 = vmatpush3.xpose.msk.msra.mxu0 %vm530_vm2, %v695_v14  ;;  %1879 = vmatprep.mubr.msk.f32.mxu0 %vm2032_vm0, %v2033_v6 }
 0x15f   : > { %1887 = vmatprep.subr.mxu0 %v2033_v6 }
 0x161   : > { %1880 = vmatmul.mubr.msk.f32.vlgmr.msra.gmra.mrb[4].mxu0 %vm530_vm2, %v693_v15 }
 0x162   : > { %1889 = vmatprep.mubr.msk.f32.mxu0 %vm2032_vm0, %v2033_v6  ;;  %1888 = vmatpush3.msra.mxu0 %v523_v32 }
 0x163   : > { %1897 = vmatprep.subr.mxu0 %v2033_v6 }
 0x230   : > { %v601_v16 = vpop.f32.mrb[2].mxu0 }
 0x231   : > { %v1871_v17 = vpop.f32.mrb[3].mxu0  ;;  %v605_v18 = vsel %vm530_vm2, %v601_v16, -inf }
 0x232   : > { %606 = vmax.xlane.f32.xlu1 %v605_v18 }
 0x234   : > { %v766_v19 = vpop.f32.mrb[4].mxu0 }
 0x235   : > { %v1881_v20 = vpop.f32.mrb[5].mxu0  ;;  %v770_v21 = vsel %vm530_vm2, %v766_v19, -inf }
 0x236   : > { %771 = vmax.xlane.f32.xlu0 %v770_v21 }
 0x2bf   : > { %v607_v22 = vpop.xlane.xlu1 %606 }
 0x2c0   : > { %v608_v23 = vsub.f32 %v601_v16, %v607_v22 }
 0x2c2   : > { %v609_v24 = vmul.f32 1.442695, %v608_v23 }
 0x2c3   : > { %v772_v25 = vpop.xlane.xlu0 %771 }
 0x2c4   : > { %2003 = vpow2.f32 %v609_v24  ;;  %v773_v26 = vsub.f32 %v766_v19, %v772_v25  ;;  %v525_v19 = vld [vmem:[%s2325_s3 + $0x18] sm:$0xff] }
 0x2c6   : > { %v774_v27 = vmul.f32 1.442695, %v773_v26 }
 0x2c8   : > { %2005 = vpow2.f32 %v774_v27  ;;  %v1802_v27 = vld [vmem:[%s2326_s4] ss:$0 sm:$0xff] }
 0x2ce   : > { %v2004_v28 = vpop.eup %2003 }
 0x2cf   : > { %v611_v29 = vsel %vm530_vm2, %v2004_v28, 0.0 }
 0x2d0   : > { %612 = vadd.xlane.f32.xlu0 %v611_v29 }
 0x2d2   : > { %v2006_v30 = vpop.eup %2005 }
 0x2d3   : > { %v776_v31 = vsel %vm530_vm2, %v2006_v30, 0.0 }
 0x2d4   : > { %777 = vadd.xlane.f32.xlu1 %v776_v31 }
 0x2e5   : > { %781 = vrot.lane.b32.xlu1 %v2160_v11, %s2037_s29  ;;  %s435_s29 = scalar_lea.vmem %s2335_s13, %s1782_s18 }
 0x2e6   : > { %616 = vrot.lane.b32.xlu0 %v2160_v11, %s2038_s30 }
 0x2e9   : > { %1005 = vrot.lane.b32.xlu1 %v2160_v11, %s2039_s14 }
 0x2ea   : > { %1003 = vrot.lane.b32.xlu0 %v2160_v11, %s2040_s15 }
 0x35d   : > { %v613_v33 = vpop.xlane.xlu0 %612 }
 0x35e   : > { %2007 = vrcp.f32 %v613_v33 }
 0x361   : > { %v778_v34 = vpop.xlane.xlu1 %777  ;;  %v617_v35 = vpop.permute.xlu0 %616 }
 0x362   : > { %2009 = vrcp.f32 %v778_v34  ;;  %1873 = vmatpush3.msra.mxu1 %v617_v35 }
 0x363   : > { %1882 = vmatprep.subr.mxu1 %v2033_v6 }
 0x365   : > { %v782_v38 = vpop.permute.xlu1 %781  ;;  %v1004_v47 = vpop.permute.xlu0 %1003 }
 0x368   : > { %v2008_v36 = vpop.eup %2007 }
 0x369   : > { %v615_v37 = vmul.f32 %v2008_v36, %v2004_v28  ;;  %v1006_v45 = vpop.permute.xlu1 %1005 }
 0x36b   : > { %1875 = vmatmul.mubr.msk.f32.vlgmr.msra.gmra.mrb[0].mxu1 %vm530_vm2, %v615_v37 }
 0x36c   : > { %v2010_v39 = vpop.eup %2009  ;;  %1883 = vmatpush3.msra.mxu1 %v782_v38  ;;  %1884 = vmatprep.mubr.msk.f32.mxu1 %vm2032_vm0, %v2033_v6 }
 0x36d   : > { %v780_v40 = vmul.f32 %v2010_v39, %v2006_v30  ;;  %1892 = vmatprep.subr.mxu1 %v2033_v6  ;;  %v1520_v39 = vld [vmem:[%s2329_s7 + $0x8] sm:$0xff] }
 0x36f   : > { %1885 = vmatmul.mubr.msk.f32.vlgmr.msra.gmra.mrb[2].mxu1 %vm530_vm2, %v780_v40 }
 0x370   : > { %1894 = vmatprep.mubr.msk.f32.mxu1 %vm2032_vm0, %v2033_v6  ;;  %1893 = vmatpush3.msra.mxu1 %v522_v41  ;;  %v1522_v41 = vld [vmem:[%s2329_s7 + $0x18] sm:$0xff] }
 0x371   : > { %1902 = vmatprep.subr.mxu1 %v2033_v6 }
 0x43e   : > { %v688_v42 = vpop.f32.mrb[0].mxu1 }
 0x43f   : > { %v1876_v43 = vpop.f32.mrb[1].mxu1  ;;  %1895 = vmatmul.mubr.msk.f32.vlgmr.msra.gmra.mrb[4].mxu1 %vm530_vm2, %v688_v42 }
 0x440   : > { %1904 = vmatprep.mubr.msk.f32.mxu1 %vm2032_vm0, %v2033_v6  ;;  %v1604_v43 = vld [vmem:[%s2331_s9] sm:$0xff] }
 0x442   : > { %v853_v44 = vpop.f32.mrb[2].mxu1 }
 0x443   : > { %v1886_v46 = vpop.f32.mrb[3].mxu1  ;;  %1890 = vmatmul.mubr.msk.f32.vlgmr.msra.gmra.mrb[6].mxu0 %vm530_vm2, %v853_v44  ;;  %v1605_v44 = vld [vmem:[%s2331_s9 + $0x8] sm:$0xff] }
 0x444   : > { %1898 = vmatpush3.xpose.msk.msra.mxu0 %vm530_vm2, %v1006_v45  ;;  %1899 = vmatprep.mubr.msk.f32.mxu0 %vm2032_vm0, %v2033_v6  ;;  %v1606_v45 = vld [vmem:[%s2331_s9 + $0x10] sm:$0xff]  ;;  %v1970_v46 = vpack.c.bf16 %v1605_v44, %v1604_v43 }
 0x445   : > { %1907 = vmatprep.subr.mxu0 %v2033_v6 }
 0x447   : > { %1900 = vmatmul.mubr.msk.f32.vlgmr.msra.gmra.mrb[8].mxu0 %vm530_vm2, %v1004_v47  ;;  %v1607_v47 = vld [vmem:[%s2331_s9 + $0x18] sm:$0xff] }
 0x448   : > { %1909 = vmatprep.mubr.msk.f32.mxu0 %vm2032_vm0, %v2033_v6  ;;  %1908 = vmatpush3.msra.mxu0 %v524_v4 }
 0x449   : > { %1917 = vmatprep.subr.mxu0 %v2033_v6 }
 0x512   : > { %v999_v48 = vpop.f32.mrb[4].mxu1 }
 0x513   : > { %v1896_v49 = vpop.f32.mrb[5].mxu1 }
 0x514   : > { %v1608_v49 = vld [vmem:[%s2331_s9 + $0x20] sm:$0xff] }
 0x516   : > { %v926_v50 = vpop.f32.mrb[6].mxu0 }
 0x517   : > { %v1000_v51 = vadd.f32 %v999_v48, %v926_v50  ;;  %v1891_v52 = vpop.f32.mrb[7].mxu0  ;;  %v1973_v48 = vpack.c.bf16 %v1607_v47, %v1606_v45  ;;  %v1609_v50 = vld [vmem:[%s2331_s9 + $0x28] sm:$0xff] }
 0x51a   : > { %v1077_v53 = vpop.f32.mrb[8].mxu0 }
 0x51b   : > { %v1901_v54 = vpop.f32.mrb[9].mxu0  ;;  %v1081_v55 = vsel %vm530_vm2, %v1077_v53, -inf }
 0x51c   : > { %1082 = vmax.xlane.f32.xlu1 %v1081_v55 }
 0x52d   : > { %1244 = vrot.lane.b32.xlu1 %v2160_v11, %s2041_s21 }
 0x531   : > { %1242 = vrot.lane.b32.xlu1 %v2160_v11, %s2042_s22 }
 0x5a9   : > { %v1083_v56 = vpop.xlane.xlu1 %1082 }
 0x5aa   : > { %v1084_v57 = vsub.f32 %v1077_v53, %v1083_v56  ;;  %v1803_v56 = vld [vmem:[%s2327_s5] ss:$0 sm:$0xff] }
 0x5ac   : > { %v1085_v58 = vmul.f32 1.442695, %v1084_v57 }
 0x5ad   : > { %v1245_v0 = vpop.permute.xlu1 %1244 }
 0x5ae   : > { %2011 = vpow2.f32 %v1085_v58  ;;  %v1804_v58 = vld [vmem:[%s2328_s6] ss:$0 sm:$0xff] }
 0x5b1   : > { %v1243_v2 = vpop.permute.xlu1 %1242 }
 0x5b8   : > { %v2012_v59 = vpop.eup %2011 }
 0x5b9   : > { %v1087_v60 = vsel %vm530_vm2, %v2012_v59, 0.0 }
 0x5ba   : > { %1088 = vadd.xlane.f32.xlu0 %v1087_v60 }
 0x5d0   : > { %1092 = vrot.lane.b32.xlu0 %v2160_v11, %s2043_s23 }
 0x647   : > { %v1089_v61 = vpop.xlane.xlu0 %1088 }
 0x648   : > { %2013 = vrcp.f32 %v1089_v61  ;;  %v1611_v61 = vld [vmem:[%s2331_s9 + $0x38] sm:$0xff] }
 0x64b   : > { %v1093_v62 = vpop.permute.xlu0 %1092 }
 0x64c   : > { %1903 = vmatpush3.msra.mxu1 %v1093_v62 }
 0x64d   : > { %1912 = vmatprep.subr.mxu1 %v2033_v6 }
 0x652   : > { %v2014_v63 = vpop.eup %2013 }
 0x653   : > { %v1091_v1 = vmul.f32 %v2014_v63, %v2012_v59  ;;  %v1805_v63 = vld [vmem:[%s2330_s8] ss:$0 sm:$0xff] }
 0x655   : > { %1905 = vmatmul.mubr.msk.f32.vlgmr.msra.gmra.mrb[6].mxu1 %vm530_vm2, %v1091_v1 }
 0x656   : > { %1913 = vmatpush3.xpose.msk.msra.mxu1 %vm530_vm2, %v1245_v0  ;;  %1914 = vmatprep.mubr.msk.f32.mxu1 %vm2032_vm0, %v2033_v6 }
 0x657   : > { %1922 = vmatprep.subr.mxu1 %v2033_v6 }
 0x659   : > { %1915 = vmatmul.mubr.msk.f32.vlgmr.msra.gmra.mrb[8].mxu1 %vm530_vm2, %v1243_v2 }
 0x65a   : > { %1924 = vmatprep.mubr.msk.f32.mxu1 %vm2032_vm0, %v2033_v6  ;;  %1923 = vmatpush3.msra.mxu1 %v525_v19 }
 0x65b   : > { %1969 = vmatprep.subr.bf16.mxu1 %v2031_v3 }
 0x728   : > { %v1164_v5 = vpop.f32.mrb[6].mxu1 }
 0x729   : > { %v1906_v7 = vpop.f32.mrb[7].mxu1  ;;  %1910 = vmatmul.mubr.msk.f32.vlgmr.msra.gmra.mrb[10].mxu0 %vm530_vm2, %v1164_v5  ;;  %v1807_v5 = vld [vmem:[%s2332_s10] ss:$0 sm:$0xff] }
 0x72a   : > { %1919 = vmatprep.mubr.msk.f32.mxu0 %vm2032_vm0, %v2033_v6 }
 0x72c   : > { %v1316_v9 = vpop.f32.mrb[8].mxu1 }
 0x72d   : > { %v1916_v10 = vpop.f32.mrb[9].mxu1  ;;  %v1320_v12 = vsel %vm530_vm2, %v1316_v9, -inf }
 0x72e   : > { %1321 = vmax.xlane.f32.xlu0 %v1320_v12 }
 0x744   : > { %1331 = vrot.lane.b32.xlu0 %v2160_v11, %s2044_s28 }
 0x7bb   : > { %v1322_v13 = vpop.xlane.xlu0 %1321 }
 0x7bc   : > { %v1323_v14 = vsub.f32 %v1316_v9, %v1322_v13 }
 0x7be   : > { %v1324_v15 = vmul.f32 1.442695, %v1323_v14 }
 0x7bf   : > { %v1332_v16 = vpop.permute.xlu0 %1331 }
 0x7c0   : > { %2015 = vpow2.f32 %v1324_v15  ;;  %1918 = vmatpush3.msra.mxu0 %v1332_v16 }
 0x7c1   : > { %1963 = vmatprep.subr.bf16.mxu0 %v2031_v3 }
 0x7ca   : > { %v2016_v17 = vpop.eup %2015 }
 0x7cb   : > { %v1326_v18 = vsel %vm530_vm2, %v2016_v17, 0.0 }
 0x7cc   : > { %1327 = vadd.xlane.f32.xlu1 %v1326_v18 }
 0x7fc   : > { %v1237_v11 = vpop.f32.mrb[10].mxu0 }
 0x7fd   : > { %v1241_v20 = vadd.f32 %v1237_v11, %v1000_v51  ;;  %v1911_v21 = vpop.f32.mrb[11].mxu0  ;;  %v1976_v51 = vpack.c.bf16 %v1609_v50, %v1608_v49 }
 0x859   : > { %v1328_v22 = vpop.xlane.xlu1 %1327 }
 0x85a   : > { %2017 = vrcp.f32 %v1328_v22  ;;  %v1809_v22 = vld [vmem:[%s2333_s11] ss:$0 sm:$0xff] }
 0x864   : > { %v2018_v23 = vpop.eup %2017 }
 0x865   : > { %v1330_v24 = vmul.f32 %v2018_v23, %v2016_v17 }
 0x867   : > { %1920 = vmatmul.mubr.msk.f32.vlgmr.msra.gmra.mrb[12].mxu0 %vm530_vm2, %v1330_v24  ;;  %v1810_v24 = vld [vmem:[%s2334_s12] ss:$0 sm:$0xff] }
 0x868   : > { %1935 = vmatprep.mubr.msk.f32.mxu0 %vm2032_vm0, %v2033_v6 }
 0x93a   : > { %v1403_v25 = vpop.f32.mrb[12].mxu0 }
 0x93b   : > { %v1921_v26 = vpop.f32.mrb[13].mxu0  ;;  %1925 = vmatmul.mubr.msk.f32.vlgmr.msra.gmra.mrb[10].mxu1 %vm530_vm2, %v1403_v25 }
 0x93c   : > { %1954 = vmatprep.mubr.msk.f32.mxu1 %vm2032_vm0, %v2033_v6  ;;  %v1519_v6 = vld [vmem:[%s2329_s7] sm:$0xff]  ;;  %1971 = vmatpush3.bf16.msra.mxu1 %v1970_v46 }
 0x93d   : > { %v1964_v40 = vpack.c.bf16 %v1520_v39, %v1519_v6  ;;  %1972 = vmatprep.subr.bf16.mxu1 %v2031_v3 }
 0x93f   : > { %1965 = vmatpush3.bf16.msra.mxu0 %v1964_v40 }
 0x940   : > { %1966 = vmatprep.subr.bf16.mxu0 %v2031_v3  ;;  %1974 = vmatpush3.bf16.msra.mxu1 %v1973_v48 }
 0x941   : > { %1975 = vmatprep.subr.bf16.mxu1 %v2031_v3 }
 0x944   : > { %1977 = vmatpush3.bf16.msra.mxu1 %v1976_v51 }
 0x945   : > { %1978 = vmatprep.subr.bf16.mxu1 %v2031_v3  ;;  %v1610_v3 = vld [vmem:[%s2331_s9 + $0x30] sm:$0xff] }
 0x946   : > { %v1979_v62 = vpack.c.bf16 %v1611_v61, %v1610_v3 }
 0x948   : > { %1980 = vmatpush3.bf16.msra.mxu1 %v1979_v62 }
 0xa0e   : > { %v1476_v28 = vpop.f32.mrb[10].mxu1 }
 0xa0f   : > { %v1480_v29 = vadd.f32 %v1476_v28, %v1241_v20  ;;  %v1926_v30 = vpop.f32.mrb[11].mxu1 }
 0xa11   : > { %v1487_v31 = vadd.f32 %v1802_v27, %v1480_v29 }
 0xa13   : > { %v1488_v32 = vadd.f32 %v1487_v31, %v2150_v8  ;;  %v1521_v8 = vld [vmem:[%s2329_s7 + $0x10] sm:$0xff] }
 0xa14   : > { %v1967_v42 = vpack.c.bf16 %v1522_v41, %v1521_v8 }
 0xa15   : > { %v1491_v33 = vsel %vm448_vm1, %v1488_v32, 0.0 }
 0xa16   : > { %1492 = vadd.xlane.f32.xlu1 %v1491_v33  ;;  %1968 = vmatpush3.bf16.msra.mxu0 %v1967_v42 }
 0xaa3   : > { %v1493_v34 = vpop.xlane.xlu1 %1492 }
 0xaa4   : > { %v1495_v35 = vmul.f32 0.03125, %v1493_v34 }
 0xaa6   : > { %v1496_v36 = vsub.f32 %v1488_v32, %v1495_v35 }
 0xaa8   : > { %v1497_v37 = vmul.f32 %v1496_v36, %v1496_v36 }
 0xaaa   : > { %v1498_v38 = vsel %vm448_vm1, %v1497_v37, 0.0 }
 0xaab   : > { %1499 = vadd.xlane.f32.xlu1 %v1498_v38 }
 0xb38   : > { %v1500_v52 = vpop.xlane.xlu1 %1499 }
 0xb39   : > { %v1501_v53 = vmul.f32 0.03125, %v1500_v52 }
 0xb3b   : > { %v1502_v54 = vadd.f32 1e-05, %v1501_v53 }
 0xb3d   : > { %2019 = vrsqrt.f32 %v1502_v54 }
 0xb47   : > { %v2020_v55 = vpop.eup %2019 }
 0xb48   : > { %v1504_v57 = vmul.f32 %v2020_v55, %v1496_v36 }
 0xb4a   : > { %v1511_v59 = vmul.f32 %v1803_v56, %v1504_v57 }
 0xb4c   : > { %v1518_v60 = vadd.f32 %v1804_v58, %v1511_v59 }
 0xb4e   : > { %1936 = vmatmul.mubr.msk.f32.vlgmr.msra.gmra.mrb[14].mxu0 %vm448_vm1, %v1518_v60 }
 0xc21   : > { %v1599_v0 = vpop.f32.mrb[14].mxu0 }
 0xc22   : > { %v1600_v1 = vadd.f32 %v1805_v63, %v1599_v0  ;;  %v1937_v2 = vpop.f32.mrb[15].mxu0 }
 0xc24   : > { %v1603_v4 = vmax.f32 %v1600_v1, 0.0 }
 0xc26   : > { %1955 = vmatmul.mubr.msk.f32.vlgmr.msra.gmra.mrb[12].mxu1 %vm1619_vm3, %v1603_v4 }
 0xcf9   : > { %v1689_v7 = vpop.f32.mrb[12].mxu1 }
 0xcfa   : > { %v1690_v9 = vadd.f32 %v1807_v5, %v1689_v7  ;;  %v1956_v10 = vpop.f32.mrb[13].mxu1 }
 0xcfc   : > { %v1693_v12 = vadd.f32 %v1690_v9, %v1518_v60 }
 0xcfe   : > { %v1696_v13 = vsel %vm448_vm1, %v1693_v12, 0.0 }
 0xcff   : > { %1697 = vadd.xlane.f32.xlu1 %v1696_v13 }
 0xd8c   : > { %v1698_v14 = vpop.xlane.xlu1 %1697 }
 0xd8d   : > { %v1699_v15 = vmul.f32 0.03125, %v1698_v14 }
 0xd8f   : > { %v1700_v16 = vsub.f32 %v1693_v12, %v1699_v15 }
 0xd91   : > { %v1701_v17 = vmul.f32 %v1700_v16, %v1700_v16 }
 0xd93   : > { %v1702_v18 = vsel %vm448_vm1, %v1701_v17, 0.0 }
 0xd94   : > { %1703 = vadd.xlane.f32.xlu1 %v1702_v18 }
 0xe21   : > { %v1704_v19 = vpop.xlane.xlu1 %1703 }
 0xe22   : > { %v1705_v11 = vmul.f32 0.03125, %v1704_v19 }
 0xe24   : > { %v1706_v20 = vadd.f32 1e-05, %v1705_v11 }
 0xe26   : > { %2021 = vrsqrt.f32 %v1706_v20 }
 0xe30   : > { %v2022_v21 = vpop.eup %2021 }
 0xe31   : > { %v1708_v23 = vmul.f32 %v2022_v21, %v1700_v16 }
 0xe33   : > { %v1715_v25 = vmul.f32 %v1809_v22, %v1708_v23 }
 0xe35   : > { %v1722_v26 = vadd.f32 %v1810_v24, %v1715_v25 }
 0xe37   : > { %1723 = vst.msk [vmem:[%s435_s29] sm:$0xff] %vm448_vm1, %v1722_v26 }
 0xe38 PF: > { %s23_s25 = sadd.s32 1, %s2029_s25  }
 0xe39   : > { %p20_p4 = scmp.ge.s32.totalorder %s23_s25, 4  }
 0xe3b   :  { %22 = sbr.rel (!%p20_p4) target bundleno = 1 (0x1), region = 102 }

// kernel: _lambda_.7
= control target key start
LH: loop header
LB: loop body
LE: loop exit
PB: predicated region body
PF: predicated region fallthrough
CT: control target
= control target key end

     0   :  { %s4163_s0 = inlined_call_operand.vmem [shape: f32[2,8,32], index: 0, kind: input, shape index: {}, may-alias: {0,22}]   ;;  %s4164_s1 = inlined_call_operand.vmem [shape: f32[2,8,32], index: 1, kind: input, shape index: {}]   ;;  %s4165_s2 = inlined_call_operand.vmem [shape: f32[32,96], index: 2, kind: input, shape index: {}]   ;;  %s4166_s3 = inlined_call_operand.vmem [shape: f32[1,96], index: 3, kind: input, shape index: {}]   ;;  %s4167_s4 = inlined_call_operand.vmem [shape: f32[32,32], index: 4, kind: input, shape index: {}]   ;;  %s4168_s5 = inlined_call_operand.vmem [shape: f32[1,32], index: 5, kind: input, shape index: {}]   ;;  %s4169_s6 = inlined_call_operand.vmem [shape: f32[1,32], index: 6, kind: input, shape index: {}, may-alias: {6,14,20}]   ;;  %s4170_s7 = inlined_call_operand.vmem [shape: f32[1,32], index: 7, kind: input, shape index: {}, may-alias: {7,15,21}]   ;;  %s4171_s8 = inlined_call_operand.vmem [shape: f32[32,32], index: 8, kind: input, shape index: {}]   ;;  %s4172_s9 = inlined_call_operand.vmem [shape: f32[1,32], index: 9, kind: input, shape index: {}]   ;;  %s4173_s10 = inlined_call_operand.vmem [shape: f32[32,64], index: 10, kind: input, shape index: {}]   ;;  %s4174_s11 = inlined_call_operand.vmem [shape: f32[1,64], index: 11, kind: input, shape index: {}]   ;;  %s4175_s12 = inlined_call_operand.vmem [shape: f32[32,32], index: 12, kind: input, shape index: {}]   ;;  %s4176_s13 = inlined_call_operand.vmem [shape: f32[1,32], index: 13, kind: input, shape index: {}]   ;;  %s4177_s14 = inlined_call_operand.vmem [shape: f32[1,32], index: 14, kind: input, shape index: {}, may-alias: {6,14,20}]   ;;  %s4178_s15 = inlined_call_operand.vmem [shape: f32[1,32], index: 15, kind: input, shape index: {}, may-alias: {7,15,21}]   ;;  %s4179_s16 = inlined_call_operand.vmem [shape: f32[32,64], index: 16, kind: input, shape index: {}]   ;;  %s4180_s17 = inlined_call_operand.vmem [shape: f32[1,64], index: 17, kind: input, shape index: {}]   ;;  %s4181_s18 = inlined_call_operand.vmem [shape: f32[64,32], index: 18, kind: input, shape index: {}]   ;;  %s4182_s19 = inlined_call_operand.vmem [shape: f32[1,32], index: 19, kind: input, shape index: {}]   ;;  %s4183_s20 = inlined_call_operand.vmem [shape: f32[1,32], index: 20, kind: input, shape index: {}, may-alias: {6,14,20}]   ;;  %s4184_s21 = inlined_call_operand.vmem [shape: f32[1,32], index: 21, kind: input, shape index: {}, may-alias: {7,15,21}]   ;;  %s4185_s22 = inlined_call_operand.vmem [shape: f32[2,8,32], index: 22, kind: output, shape index: {}, may-alias: {0,22}]  }
   0x1   :  { %4199 = sst [smem:[#allocation2_spill]] %s4163_s0 }
   0x2   :  { %4200 = sst [smem:[#allocation3_spill]] %s4164_s1 }
   0x3   :  { %4201 = sst [smem:[#allocation4_spill]] %s4165_s2 }
   0x4   :  { %4202 = sst [smem:[#allocation5_spill]] %s4166_s3  ;;  %s3774_s3 = smov 0  }
   0x5   :  { %4203 = sst [smem:[#allocation6_spill]] %s4167_s4 }
   0x6   :  { %4204 = sst [smem:[#allocation7_spill]] %s4168_s5 }
   0x7   :  { %4205 = sst [smem:[#allocation8_spill]] %s4169_s6 }
   0x8 LB: > { %s3221_s28 = sadd.s32 4294967295, %s3643_s3   ;;  %p3225_p0 = scmp.ge.s32.totalorder %s3643_s3, 1  ;;  %s3643_s3 = sphi %s3774_s3, %s32_s3  }
   0x9   : > { %p620_p1 = scmp.lt.s32.totalorder %s3643_s3, 3 }
   0xb   : > { %p621_p2 = pnand %p3225_p0, %p620_p1 }
   0xc   : > { %s4206_s4 = sld [smem:[#allocation4_spill]] (!%p621_p2)  ;;  %v3645_v3 = vmov (!%p621_p2), 0.0|0.0   ;;  %vm3646_vm0 = vmmov (!%p621_p2), 0   ;;  %v3647_v6 = vmov (!%p621_p2), 0.0   ;;  %p684_p3 = scmp.lt.s32.totalorder (!%p621_p2), %s3221_s28, 1  ;;  %vm709_vm1 = vcmask (!%p621_p2), 261120  }
   0xd   : > { %624 = sbr.rel (%p621_p2) target bundleno = 6524 (0x197c), region = 108  ;;  %3541 = vmatprep.subr.bf16.mxu0 (!%p621_p2), %v3645_v3  ;;  %3366 = vmatprep.mubr.msk.f32.mxu0 (!%p621_p2), %vm3646_vm0, %v3647_v6  ;;  %s4207_s27 = sld [smem:[#allocation2_spill]] (!%p621_p2)  ;;  %vm791_vm2 = vcmask (!%p621_p2), 64512   ;;  %v866_v16 = vlaneseq (!%p621_p2)  ;;  %vm3051_vm4 = vcmask (!%p621_p2), 523264  }
   0xe   : > { %3374 = vmatprep.subr.mxu1 (!%p621_p2), %v3647_v6  ;;  %3376 = vmatprep.mubr.msk.f32.mxu1 (!%p621_p2), %vm3646_vm0, %v3647_v6  ;;  %s4208_s0 = sld [smem:[#allocation5_spill]] (!%p621_p2)  ;;  %s4196_s23 = smov (!%p621_p2), 120  }
   0xf   : > { %s4192_s1 = smov (!%p621_p2), 96   ;;  %s4195_s5 = smov (!%p621_p2), 88   ;;  %v3836_v17 = vshrl.u32 (!%p621_p2), %v866_v16, 7  ;;  %v3838_v18 = vand.u32 (!%p621_p2), 127, %v866_v16 }
  0x10   : > { %s3651_s24 = smov (!%p621_p2), 56   ;;  %s3652_s6 = smov (!%p621_p2), 64  }
  0x11   : > { %vm870_vm3 = vcmp.ge.s32.totalorder (!%p621_p2), %v3836_v17, %v3838_v18  ;;  %s4189_s26 = smov (!%p621_p2), 80   ;;  %s4193_s2 = smov (!%p621_p2), 112  }
  0x12   : > { %v698_v0 = vld [vmem:[%s4206_s4] sm:$0xff] (!%p621_p2)  ;;  %v699_v1 = vld [vmem:[%s4206_s4 + $0x8] sm:$0xff] (!%p621_p2)  ;;  %v700_v2 = vld [vmem:[%s4206_s4 + $0x10] sm:$0xff] (!%p621_p2)  ;;  %s4209_s30 = sld [smem:[#allocation6_spill]] (!%p621_p2) }
  0x13   : > { %v3542_v4 = vpack.c.bf16 (!%p621_p2), %v699_v1, %v698_v0  ;;  %v701_v5 = vld [vmem:[%s4206_s4 + $0x18] sm:$0xff] (!%p621_p2)  ;;  %s4216_s4 = smov (!%p621_p2), 96  }
  0x14   : > { %v3545_v7 = vpack.c.bf16 %v701_v5, %v700_v2  ;;  %s4221_s28 = smov (!%p684_p3, %s3221_s28), 1  ;;  %v3229_v9 = vld [vmem:[%s4208_s0] ss:$0 sm:$0xff]  ;;  %s3658_s0 = smov 40  }
  0x15   : > { %3543 = vmatpush3.bf16.msra.mxu0 %v3542_v4  ;;  %s3801_s25 = sshll.u32 %s4221_s28, 3  ;;  %s4217_s28 = smov 104  }
  0x16   : > { %3544 = vmatprep.subr.bf16.mxu0 %v3645_v3  ;;  %s687_s29 = scalar_lea.vmem %s4207_s27, %s3801_s25  ;;  %s3657_s27 = smov 48  }
  0x17   : > { %v3807_v8 = vld [vmem:[%s687_s29] sm:$0xff]  ;;  %s695_s29 = scalar_lea.vmem %s4185_s22, %s3801_s25 }
  0x18   : > { %v784_v37 = vld [vmem:[%s4209_s30 + $0x8] sm:$0xff]  ;;  %v783_v46 = vld [vmem:[%s4209_s30] sm:$0xff]  ;;  %v786_v17 = vld [vmem:[%s4209_s30 + $0x18] sm:$0xff] }
  0x19   : > { %3546 = vmatpush3.bf16.msra.mxu0 %v3545_v7 }
  0x1a   : > { %3369 = vmatprep.subr.mxu0 %v3647_v6 }
  0x1c   : > { %3367 = vmatmul.mubr.msk.f32.vlgmr.msra.gmra.mrb[0].mxu0 %vm709_vm1, %v3807_v8 }
  0x1d   : > { %3371 = vmatprep.mubr.msk.f32.mxu0 %vm3646_vm0, %v3647_v6 }
  0xef   : > { %v779_v10 = vpop.f32.mrb[0].mxu0 }
  0xf0   : > { %v3817_v11 = vadd.f32 %v3229_v9, %v779_v10  ;;  %v3368_v12 = vpop.f32.mrb[1].mxu0 }
  0xf2   : > { %959 = vrot.lane.b32.xlu1 %v3817_v11, %s4196_s23  ;;  %789 = vrot.lane.b32.xlu0 %v3817_v11, %s4192_s1  ;;  %s4211_s23 = sld [smem:[#allocation3_spill]]  ;;  %s4214_s1 = smov 88  }
  0xf6   : > { %961 = vrot.lane.b32.xlu0 %v3817_v11, %s4195_s5  ;;  %s4212_s5 = sld [smem:[#allocation8_spill]] }
 0x164   : > { %v790_v13 = vpop.permute.xlu0 %789  ;;  %v960_v15 = vpop.permute.xlu1 %959 }
 0x165   : > { %3370 = vmatpush3.xpose.msk.msra.mxu0 %vm791_vm2, %v790_v13  ;;  %v785_v13 = vld [vmem:[%s4209_s30 + $0x10] sm:$0xff] }
 0x166   : > { %3379 = vmatprep.subr.mxu0 %v3647_v6 }
 0x168   : > { %3372 = vmatmul.mubr.msk.f32.vlgmr.msra.gmra.mrb[2].mxu0 %vm791_vm2, %v3817_v11  ;;  %v962_v14 = vpop.permute.xlu0 %961 }
 0x169   : > { %3380 = vmatpush3.xpose.msk.msra.mxu0 %vm791_vm2, %v962_v14  ;;  %3381 = vmatprep.mubr.msk.f32.mxu0 %vm3646_vm0, %v3647_v6 }
 0x16a   : > { %3389 = vmatprep.subr.mxu0 %v3647_v6 }
 0x16c   : > { %3382 = vmatmul.mubr.msk.f32.vlgmr.msra.gmra.mrb[4].mxu0 %vm791_vm2, %v960_v15 }
 0x16d   : > { %3391 = vmatprep.mubr.msk.f32.mxu0 %vm3646_vm0, %v3647_v6  ;;  %3390 = vmatpush3.msra.mxu0 %v784_v37 }
 0x16e   : > { %3399 = vmatprep.subr.mxu0 %v3647_v6 }
 0x23b   : > { %v862_v19 = vpop.f32.mrb[2].mxu0 }
 0x23c   : > { %v871_v20 = vsel %vm870_vm3, %v862_v19, -1e+30  ;;  %v3373_v21 = vpop.f32.mrb[3].mxu0 }
 0x23d   : > { %v872_v22 = vsel %vm791_vm2, %v871_v20, -inf }
 0x23e   : > { %873 = vmax.xlane.f32.xlu1 %v872_v22 }
 0x23f   : > { %v1033_v23 = vpop.f32.mrb[4].mxu0 }
 0x240   : > { %v1037_v24 = vsel %vm870_vm3, %v1033_v23, -1e+30  ;;  %v3383_v25 = vpop.f32.mrb[5].mxu0 }
 0x241   : > { %v1038_v26 = vsel %vm791_vm2, %v1037_v24, -inf }
 0x242   : > { %1039 = vmax.xlane.f32.xlu0 %v1038_v26 }
 0x2cb   : > { %v874_v27 = vpop.xlane.xlu1 %873 }
 0x2cc   : > { %v875_v28 = vsub.f32 %v871_v20, %v874_v27 }
 0x2ce   : > { %v876_v29 = vmul.f32 1.442695, %v875_v28 }
 0x2cf   : > { %v1040_v30 = vpop.xlane.xlu0 %1039 }
 0x2d0   : > { %3599 = vpow2.f32 %v876_v29  ;;  %v1041_v31 = vsub.f32 %v1037_v24, %v1040_v30 }
 0x2d2   : > { %v1042_v32 = vmul.f32 1.442695, %v1041_v31 }
 0x2d4   : > { %3601 = vpow2.f32 %v1042_v32 }
 0x2da   : > { %v3600_v33 = vpop.eup %3599 }
 0x2db   : > { %v878_v34 = vsel %vm791_vm2, %v3600_v33, 0.0 }
 0x2dc   : > { %879 = vadd.xlane.f32.xlu0 %v878_v34 }
 0x2de   : > { %v3602_v35 = vpop.eup %3601 }
 0x2df   : > { %v1044_v36 = vsel %vm791_vm2, %v3602_v35, 0.0 }
 0x2e0   : > { %1045 = vadd.xlane.f32.xlu1 %v1044_v36 }
 0x2f1   : > { %1049 = vrot.lane.b32.xlu1 %v3817_v11, %s3651_s24  ;;  %s4188_s24 = smov 72  }
 0x2f2   : > { %883 = vrot.lane.b32.xlu0 %v3817_v11, %s3652_s6  ;;  %s4190_s6 = smov 104  }
 0x2f5   : > { %1273 = vrot.lane.b32.xlu1 %v3817_v11, %s4189_s26  ;;  %s691_s26 = scalar_lea.vmem %s4211_s23, %s3801_s25 }
 0x2f6   : > { %1271 = vrot.lane.b32.xlu0 %v3817_v11, %s4193_s2 }
 0x369   : > { %v880_v38 = vpop.xlane.xlu0 %879 }
 0x36a   : > { %3603 = vrcp.f32 %v880_v38 }
 0x36d   : > { %v1046_v39 = vpop.xlane.xlu1 %1045  ;;  %v884_v40 = vpop.permute.xlu0 %883 }
 0x36e   : > { %3605 = vrcp.f32 %v1046_v39  ;;  %3375 = vmatpush3.msra.mxu1 %v884_v40 }
 0x36f   : > { %3384 = vmatprep.subr.mxu1 %v3647_v6 }
 0x371   : > { %v1050_v43 = vpop.permute.xlu1 %1049  ;;  %v1272_v52 = vpop.permute.xlu0 %1271 }
 0x374   : > { %v3604_v41 = vpop.eup %3603 }
 0x375   : > { %v882_v42 = vmul.f32 %v3604_v41, %v3600_v33  ;;  %v1274_v50 = vpop.permute.xlu1 %1273 }
 0x377   : > { %3377 = vmatmul.mubr.msk.f32.vlgmr.msra.gmra.mrb[0].mxu1 %vm791_vm2, %v882_v42 }
 0x378   : > { %v3606_v44 = vpop.eup %3605  ;;  %3385 = vmatpush3.msra.mxu1 %v1050_v43  ;;  %3386 = vmatprep.mubr.msk.f32.mxu1 %vm3646_vm0, %v3647_v6 }
 0x379   : > { %v1048_v45 = vmul.f32 %v3606_v44, %v3602_v35  ;;  %3394 = vmatprep.subr.mxu1 %v3647_v6 }
 0x37b   : > { %3387 = vmatmul.mubr.msk.f32.vlgmr.msra.gmra.mrb[2].mxu1 %vm791_vm2, %v1048_v45 }
 0x37c   : > { %3396 = vmatprep.mubr.msk.f32.mxu1 %vm3646_vm0, %v3647_v6  ;;  %3395 = vmatpush3.msra.mxu1 %v783_v46  ;;  %v1873_v46 = vld [vmem:[%s4173_s10] sm:$0xff] }
 0x37d   : > { %3404 = vmatprep.subr.mxu1 %v3647_v6 }
 0x44a   : > { %v955_v47 = vpop.f32.mrb[0].mxu1 }
 0x44b   : > { %v3378_v48 = vpop.f32.mrb[1].mxu1  ;;  %3397 = vmatmul.mubr.msk.f32.vlgmr.msra.gmra.mrb[4].mxu1 %vm791_vm2, %v955_v47  ;;  %v1874_v47 = vld [vmem:[%s4173_s10 + $0x8] sm:$0xff] }
 0x44c   : > { %3406 = vmatprep.mubr.msk.f32.mxu1 %vm3646_vm0, %v3647_v6  ;;  %v1789_v48 = vld [vmem:[%s4171_s8] sm:$0xff] }
 0x44e   : > { %v1121_v49 = vpop.f32.mrb[2].mxu1 }
 0x44f   : > { %v3388_v51 = vpop.f32.mrb[3].mxu1  ;;  %3392 = vmatmul.mubr.msk.f32.vlgmr.msra.gmra.mrb[6].mxu0 %vm791_vm2, %v1121_v49  ;;  %v1790_v49 = vld [vmem:[%s4171_s8 + $0x8] sm:$0xff] }
 0x450   : > { %3400 = vmatpush3.xpose.msk.msra.mxu0 %vm791_vm2, %v1274_v50  ;;  %3401 = vmatprep.mubr.msk.f32.mxu0 %vm3646_vm0, %v3647_v6  ;;  %v1875_v50 = vld [vmem:[%s4173_s10 + $0x10] sm:$0xff]  ;;  %v3548_v51 = vpack.c.bf16 %v1790_v49, %v1789_v48 }
 0x451   : > { %3409 = vmatprep.subr.mxu0 %v3647_v6 }
 0x453   : > { %3402 = vmatmul.mubr.msk.f32.vlgmr.msra.gmra.mrb[8].mxu0 %vm791_vm2, %v1272_v52  ;;  %v1876_v52 = vld [vmem:[%s4173_s10 + $0x18] sm:$0xff] }
 0x454   : > { %3411 = vmatprep.mubr.msk.f32.mxu0 %vm3646_vm0, %v3647_v6  ;;  %3410 = vmatpush3.msra.mxu0 %v785_v13 }
 0x455   : > { %3419 = vmatprep.subr.mxu0 %v3647_v6 }
 0x51e   : > { %v1267_v53 = vpop.f32.mrb[4].mxu1 }
 0x51f   : > { %v3398_v54 = vpop.f32.mrb[5].mxu1 }
 0x520   : > { %v1791_v54 = vld [vmem:[%s4171_s8 + $0x10] sm:$0xff] }
 0x522   : > { %v1194_v55 = vpop.f32.mrb[6].mxu0 }
 0x523   : > { %v3885_v56 = vadd.f32 %v1267_v53, %v1194_v55  ;;  %v3393_v57 = vpop.f32.mrb[7].mxu0  ;;  %v3557_v53 = vpack.c.bf16 %v1876_v52, %v1875_v50  ;;  %v1792_v55 = vld [vmem:[%s4171_s8 + $0x18] sm:$0xff] }
 0x524   : > { %v3551_v57 = vpack.c.bf16 %v1792_v55, %v1791_v54 }
 0x526   : > { %v1345_v58 = vpop.f32.mrb[8].mxu0 }
 0x527   : > { %v1349_v59 = vsel %vm870_vm3, %v1345_v58, -1e+30  ;;  %v3403_v60 = vpop.f32.mrb[9].mxu0 }
 0x528   : > { %v1350_v61 = vsel %vm791_vm2, %v1349_v59, -inf }
 0x529   : > { %1351 = vmax.xlane.f32.xlu1 %v1350_v61 }
 0x53a   : > { %1513 = vrot.lane.b32.xlu1 %v3817_v11, %s4188_s24  ;;  %s4219_s24 = smov 72  }
 0x53e   : > { %1511 = vrot.lane.b32.xlu1 %v3817_v11, %s4190_s6  ;;  %s4215_s6 = smov 112  }
 0x5b6   : > { %v1352_v62 = vpop.xlane.xlu1 %1351 }
 0x5b7   : > { %v1353_v63 = vsub.f32 %v1349_v59, %v1352_v62  ;;  %v3248_v62 = vld [vmem:[%s4212_s5] ss:$0 sm:$0xff] }
 0x5b9   : > { %v1354_v0 = vmul.f32 1.442695, %v1353_v63 }
 0x5ba   : > { %v1514_v9 = vpop.permute.xlu1 %1513 }
 0x5bb   : > { %3607 = vpow2.f32 %v1354_v0  ;;  %v3249_v0 = vld [vmem:[%s4170_s7] ss:$0 sm:$0xff] }
 0x5be   : > { %v1512_v12 = vpop.permute.xlu1 %1511 }
 0x5c5   : > { %v3608_v1 = vpop.eup %3607 }
 0x5c6   : > { %v1356_v2 = vsel %vm791_vm2, %v3608_v1, 0.0 }
 0x5c7   : > { %1357 = vadd.xlane.f32.xlu0 %v1356_v2 }
 0x5dd   : > { %1361 = vrot.lane.b32.xlu0 %v3817_v11, %s3657_s27  ;;  %s4210_s27 = sld [smem:[#allocation7_spill]] }
 0x5e3   : > { %v3247_v34 = vld [vmem:[%s4210_s27] ss:$0 sm:$0xff]  ;;  %s4213_s27 = smov 120  }
 0x654   : > { %v1358_v4 = vpop.xlane.xlu0 %1357 }
 0x655   : > { %3609 = vrcp.f32 %v1358_v4  ;;  %v3252_v4 = vld [vmem:[%s4174_s11] ss:$0 sm:$0xff] }
 0x658   : > { %v1362_v5 = vpop.permute.xlu0 %1361 }
 0x659   : > { %3405 = vmatpush3.msra.mxu1 %v1362_v5 }
 0x65a   : > { %3414 = vmatprep.subr.mxu1 %v3647_v6 }
 0x65f   : > { %v3610_v7 = vpop.eup %3609 }
 0x660   : > { %v1360_v10 = vmul.f32 %v3610_v7, %v3608_v1 }
 0x662   : > { %3407 = vmatmul.mubr.msk.f32.vlgmr.msra.gmra.mrb[6].mxu1 %vm791_vm2, %v1360_v10  ;;  %v3250_v10 = vld [vmem:[%s4172_s9] ss:$0 sm:$0xff] }
 0x663   : > { %3415 = vmatpush3.xpose.msk.msra.mxu1 %vm791_vm2, %v1514_v9  ;;  %3416 = vmatprep.mubr.msk.f32.mxu1 %vm3646_vm0, %v3647_v6 }
 0x664   : > { %3424 = vmatprep.subr.mxu1 %v3647_v6 }
 0x666   : > { %3417 = vmatmul.mubr.msk.f32.vlgmr.msra.gmra.mrb[8].mxu1 %vm791_vm2, %v1512_v12 }
 0x667   : > { %3426 = vmatprep.mubr.msk.f32.mxu1 %vm3646_vm0, %v3647_v6  ;;  %3425 = vmatpush3.msra.mxu1 %v786_v17 }
 0x668   : > { %3553 = vmatprep.subr.bf16.mxu1 %v3645_v3 }
 0x735   : > { %v1433_v14 = vpop.f32.mrb[6].mxu1 }
 0x736   : > { %v3408_v15 = vpop.f32.mrb[7].mxu1  ;;  %3412 = vmatmul.mubr.msk.f32.vlgmr.msra.gmra.mrb[10].mxu0 %vm791_vm2, %v1433_v14 }
 0x737   : > { %3421 = vmatprep.mubr.msk.f32.mxu0 %vm3646_vm0, %v3647_v6 }
 0x739   : > { %v1585_v16 = vpop.f32.mrb[8].mxu1 }
 0x73a   : > { %v1589_v19 = vsel %vm870_vm3, %v1585_v16, -1e+30  ;;  %v3418_v20 = vpop.f32.mrb[9].mxu1 }
 0x73b   : > { %v1590_v21 = vsel %vm791_vm2, %v1589_v19, -inf }
 0x73c   : > { %1591 = vmax.xlane.f32.xlu0 %v1590_v21 }
 0x752   : > { %1601 = vrot.lane.b32.xlu0 %v3817_v11, %s3658_s0  ;;  %s4218_s0 = smov 80  }
 0x7c9   : > { %v1592_v22 = vpop.xlane.xlu0 %1591 }
 0x7ca   : > { %v1593_v23 = vsub.f32 %v1589_v19, %v1592_v22 }
 0x7cc   : > { %v1594_v24 = vmul.f32 1.442695, %v1593_v23 }
 0x7cd   : > { %v1602_v25 = vpop.permute.xlu0 %1601 }
 0x7ce   : > { %3611 = vpow2.f32 %v1594_v24  ;;  %3420 = vmatpush3.msra.mxu0 %v1602_v25 }
 0x7cf   : > { %3547 = vmatprep.subr.bf16.mxu0 %v3645_v3 }
 0x7d8   : > { %v3612_v26 = vpop.eup %3611 }
 0x7d9   : > { %v1596_v27 = vsel %vm791_vm2, %v3612_v26, 0.0 }
 0x7da   : > { %1597 = vadd.xlane.f32.xlu1 %v1596_v27 }
 0x809   : > { %v1506_v11 = vpop.f32.mrb[10].mxu0 }
 0x80a   : > { %v1510_v18 = vadd.f32 %v1506_v11, %v3885_v56  ;;  %v3413_v28 = vpop.f32.mrb[11].mxu0  ;;  %v697_v56 = vld [vmem:[%s691_s26] sm:$0xff] }
 0x867   : > { %v1598_v29 = vpop.xlane.xlu1 %1597 }
 0x868   : > { %3613 = vrcp.f32 %v1598_v29 }
 0x872   : > { %v3614_v30 = vpop.eup %3613 }
 0x873   : > { %v1600_v31 = vmul.f32 %v3614_v30, %v3612_v26 }
 0x875   : > { %3422 = vmatmul.mubr.msk.f32.vlgmr.msra.gmra.mrb[12].mxu0 %vm791_vm2, %v1600_v31 }
 0x876   : > { %3437 = vmatprep.mubr.msk.f32.mxu0 %vm3646_vm0, %v3647_v6  ;;  %3549 = vmatpush3.bf16.msra.mxu0 %v3548_v51 }
 0x877   : > { %3550 = vmatprep.subr.bf16.mxu0 %v3645_v3 }
 0x87a   : > { %3552 = vmatpush3.bf16.msra.mxu0 %v3551_v57 }
 0x87b   : > { %3451 = vmatprep.subr.mxu0 %v3647_v6 }
 0x948   : > { %v1673_v32 = vpop.f32.mrb[12].mxu0 }
 0x949   : > { %v3423_v33 = vpop.f32.mrb[13].mxu0  ;;  %3427 = vmatmul.mubr.msk.f32.vlgmr.msra.gmra.mrb[10].mxu1 %vm791_vm2, %v1673_v32 }
 0x94a   : > { %3448 = vmatprep.mubr.msk.f32.mxu1 %vm3646_vm0, %v3647_v6 }
 0xa1c   : > { %v1746_v35 = vpop.f32.mrb[10].mxu1 }
 0xa1d   : > { %v1750_v36 = vadd.f32 %v1746_v35, %v1510_v18  ;;  %v3428_v37 = vpop.f32.mrb[11].mxu1 }
 0xa1f   : > { %v1757_v38 = vadd.f32 %v3247_v34, %v1750_v36 }
 0xa21   : > { %v1758_v39 = vadd.f32 %v1757_v38, %v3807_v8  ;;  %v3554_v8 = vpack.c.bf16 %v1874_v47, %v1873_v46 }
 0xa23   : > { %v1761_v40 = vsel %vm709_vm1, %v1758_v39, 0.0  ;;  %3555 = vmatpush3.bf16.msra.mxu1 %v3554_v8 }
 0xa24   : > { %1762 = vadd.xlane.f32.xlu1 %v1761_v40  ;;  %3556 = vmatprep.subr.bf16.mxu1 %v3645_v3  ;;  %v1957_v40 = vld [vmem:[%s4175_s12] sm:$0xff] }
 0xa27   : > { %3558 = vmatpush3.bf16.msra.mxu1 %v3557_v53 }
 0xa28   : > { %3456 = vmatprep.subr.mxu1 %v3647_v6 }
 0xa2a   : > { %3449 = vmatmul.mubr.msk.f32.vlgmr.msra.gmra.mrb[12].mxu1 %vm709_vm1, %v697_v56 }
 0xa2b   : > { %3458 = vmatprep.mubr.msk.f32.mxu1 %vm3646_vm0, %v3647_v6 }
 0xab1   : > { %v1763_v41 = vpop.xlane.xlu1 %1762 }
 0xab2   : > { %v1765_v42 = vmul.f32 0.03125, %v1763_v41  ;;  %v1958_v41 = vld [vmem:[%s4175_s12 + $0x8] sm:$0xff] }
 0xab4   : > { %v1766_v43 = vsub.f32 %v1758_v39, %v1765_v42 }
 0xab6   : > { %v1767_v44 = vmul.f32 %v1766_v43, %v1766_v43 }
 0xab8   : > { %v1768_v45 = vsel %vm709_vm1, %v1767_v44, 0.0 }
 0xab9   : > { %1769 = vadd.xlane.f32.xlu1 %v1768_v45 }
 0xafd   : > { %v1953_v5 = vpop.f32.mrb[12].mxu1 }
 0xafe   : > { %v3987_v7 = vadd.f32 %v3252_v4, %v1953_v5  ;;  %v3450_v9 = vpop.f32.mrb[13].mxu1  ;;  %v1959_v4 = vld [vmem:[%s4175_s12 + $0x10] sm:$0xff] }
 0xb00   : > { %2127 = vrot.lane.b32.xlu1 %v3987_v7, %s4213_s27 }
 0xb46   : > { %v1770_v58 = vpop.xlane.xlu1 %1769 }
 0xb47   : > { %v1771_v59 = vmul.f32 0.03125, %v1770_v58 }
 0xb49   : > { %v1772_v60 = vadd.f32 1e-05, %v1771_v59 }
 0xb4b   : > { %3615 = vrsqrt.f32 %v1772_v60 }
 0xb55   : > { %v3616_v61 = vpop.eup %3615 }
 0xb56   : > { %v1774_v63 = vmul.f32 %v3616_v61, %v1766_v43 }
 0xb58   : > { %v1781_v1 = vmul.f32 %v3248_v62, %v1774_v63 }
 0xb5a   : > { %v3978_v2 = vadd.f32 %v3249_v0, %v1781_v1 }
 0xb5c   : > { %3438 = vmatmul.mubr.msk.f32.vlgmr.msra.gmra.mrb[14].mxu0 %vm709_vm1, %v3978_v2 }
 0xb5d   : > { %3453 = vmatprep.mubr.msk.f32.mxu0 %vm3646_vm0, %v3647_v6  ;;  %3452 = vmatpush3.xpose.msk.msra.mxu0 %vm791_vm2, %v3987_v7 }
 0xb5e   : > { %3461 = vmatprep.subr.mxu0 %v3647_v6 }
 0xb72   : > { %v2128_v15 = vpop.permute.xlu1 %2127 }
 0xc2f   : > { %v1869_v12 = vpop.f32.mrb[14].mxu0 }
 0xc30   : > { %v3997_v13 = vadd.f32 %v3250_v10, %v1869_v12  ;;  %v3439_v14 = vpop.f32.mrb[15].mxu0 }
 0xc32   : > { %2125 = vrot.lane.b32.xlu0 %v3997_v13, %s4213_s27  ;;  %3454 = vmatmul.mubr.msk.f32.vlgmr.msra.gmra.mrb[16].mxu0 %vm791_vm2, %v3997_v13 }
 0xc33   : > { %3462 = vmatpush3.xpose.msk.msra.mxu0 %vm791_vm2, %v2128_v15  ;;  %3463 = vmatprep.mubr.msk.f32.mxu0 %vm3646_vm0, %v3647_v6 }
 0xc34   : > { %3471 = vmatprep.subr.mxu0 %v3647_v6 }
 0xca4   : > { %v2126_v16 = vpop.permute.xlu0 %2125 }
 0xca5   : > { %3464 = vmatmul.mubr.msk.f32.vlgmr.msra.gmra.mrb[18].mxu0 %vm791_vm2, %v2126_v16 }
 0xca6   : > { %3473 = vmatprep.mubr.msk.f32.mxu0 %vm3646_vm0, %v3647_v6  ;;  %3472 = vmatpush3.msra.mxu0 %v1958_v41  ;;  %v2954_v41 = vld [vmem:[%s4179_s16 + $0x18] sm:$0xff] }
 0xca7   : > { %3481 = vmatprep.subr.mxu0 %v3647_v6 }
 0xd05   : > { %v2034_v19 = vpop.f32.mrb[16].mxu0 }
 0xd06   : > { %v3455_v20 = vpop.f32.mrb[17].mxu0  ;;  %v2038_v21 = vsel %vm791_vm2, %v2034_v19, -inf }
 0xd07   : > { %2039 = vmax.xlane.f32.xlu0 %v2038_v21 }
 0xd78   : > { %v2199_v22 = vpop.f32.mrb[18].mxu0 }
 0xd79   : > { %v3465_v23 = vpop.f32.mrb[19].mxu0  ;;  %v2203_v24 = vsel %vm791_vm2, %v2199_v22, -inf }
 0xd7a   : > { %2204 = vmax.xlane.f32.xlu1 %v2203_v24 }
 0xd8b   : > { %2214 = vrot.lane.b32.xlu1 %v3987_v7, %s4214_s1 }
 0xd8f   : > { %2438 = vrot.lane.b32.xlu1 %v3987_v7, %s4215_s6 }
 0xd94   : > { %v2040_v25 = vpop.xlane.xlu0 %2039 }
 0xd95   : > { %v2041_v26 = vsub.f32 %v2034_v19, %v2040_v25 }
 0xd97   : > { %v2042_v27 = vmul.f32 1.442695, %v2041_v26 }
 0xd99   : > { %3617 = vpow2.f32 %v2042_v27 }
 0xda3   : > { %v3618_v17 = vpop.eup %3617 }
 0xda4   : > { %v2044_v11 = vsel %vm791_vm2, %v3618_v17, 0.0 }
 0xda5   : > { %2045 = vadd.xlane.f32.xlu0 %v2044_v11 }
 0xe07   : > { %v2205_v18 = vpop.xlane.xlu1 %2204 }
 0xe08   : > { %v2206_v28 = vsub.f32 %v2199_v22, %v2205_v18  ;;  %v1960_v22 = vld [vmem:[%s4175_s12 + $0x18] sm:$0xff]  ;;  %v3270_v18 = vld [vmem:[%s4176_s13] ss:$0 sm:$0xff] }
 0xe0a   : > { %v2207_v29 = vmul.f32 1.442695, %v2206_v28 }
 0xe0b   : > { %v2215_v37 = vpop.permute.xlu1 %2214 }
 0xe0c   : > { %3619 = vpow2.f32 %v2207_v29 }
 0xe0f   : > { %v2439_v45 = vpop.permute.xlu1 %2438 }
 0xe16   : > { %v3620_v30 = vpop.eup %3619 }
 0xe17   : > { %v2209_v31 = vsel %vm791_vm2, %v3620_v30, 0.0 }
 0xe18   : > { %2210 = vadd.xlane.f32.xlu0 %v2209_v31 }
 0xe2e   : > { %2049 = vrot.lane.b32.xlu0 %v3987_v7, %s4216_s4 }
 0xe32   : > { %2436 = vrot.lane.b32.xlu0 %v3997_v13, %s4215_s6  ;;  %v2046_v32 = vpop.xlane.xlu0 %2045 }
 0xe33   : > { %3621 = vrcp.f32 %v2046_v32 }
 0xe3d   : > { %v3622_v34 = vpop.eup %3621 }
 0xe3e   : > { %v2048_v35 = vmul.f32 %v3622_v34, %v3618_v17 }
 0xea5   : > { %v2211_v33 = vpop.xlane.xlu0 %2210 }
 0xea6   : > { %3623 = vrcp.f32 %v2211_v33 }
 0xea9   : > { %v2050_v36 = vpop.permute.xlu0 %2049 }
 0xeaa   : > { %3457 = vmatpush3.msra.mxu1 %v2050_v36 }
 0xeab   : > { %3459 = vmatmul.mubr.msk.f32.vlgmr.msra.gmra.mrb[14].mxu1 %vm791_vm2, %v2048_v35  ;;  %3466 = vmatprep.subr.mxu1 %v3647_v6 }
 0xeac   : > { %3467 = vmatpush3.msra.mxu1 %v2215_v37  ;;  %3468 = vmatprep.mubr.msk.f32.mxu1 %vm3646_vm0, %v3647_v6 }
 0xead   : > { %3476 = vmatprep.subr.mxu1 %v3647_v6  ;;  %v2437_v47 = vpop.permute.xlu0 %2436 }
 0xeb0   : > { %v3624_v38 = vpop.eup %3623 }
 0xeb1   : > { %v2213_v39 = vmul.f32 %v3624_v38, %v3620_v30 }
 0xeb3   : > { %3469 = vmatmul.mubr.msk.f32.vlgmr.msra.gmra.mrb[16].mxu1 %vm791_vm2, %v2213_v39  ;;  %v2952_v39 = vld [vmem:[%s4179_s16 + $0x8] sm:$0xff] }
 0xeb4   : > { %3478 = vmatprep.mubr.msk.f32.mxu1 %vm3646_vm0, %v3647_v6  ;;  %3477 = vmatpush3.msra.mxu1 %v1957_v40 }
 0xeb5   : > { %3486 = vmatprep.subr.mxu1 %v3647_v6 }
 0xf7e   : > { %v2121_v42 = vpop.f32.mrb[14].mxu1 }
 0xf7f   : > { %v3460_v43 = vpop.f32.mrb[15].mxu1  ;;  %3479 = vmatmul.mubr.msk.f32.vlgmr.msra.gmra.mrb[18].mxu1 %vm791_vm2, %v2121_v42 }
 0xf80   : > { %3488 = vmatprep.mubr.msk.f32.mxu1 %vm3646_vm0, %v3647_v6  ;;  %v3036_v43 = vld [vmem:[%s4181_s18] sm:$0xff] }
 0xf86   : > { %v2286_v44 = vpop.f32.mrb[16].mxu1 }
 0xf87   : > { %v3470_v46 = vpop.f32.mrb[17].mxu1  ;;  %3474 = vmatmul.mubr.msk.f32.vlgmr.msra.gmra.mrb[20].mxu0 %vm791_vm2, %v2286_v44  ;;  %v3037_v44 = vld [vmem:[%s4181_s18 + $0x8] sm:$0xff] }
 0xf88   : > { %3482 = vmatpush3.xpose.msk.msra.mxu0 %vm791_vm2, %v2439_v45  ;;  %3483 = vmatprep.mubr.msk.f32.mxu0 %vm3646_vm0, %v3647_v6  ;;  %v3038_v45 = vld [vmem:[%s4181_s18 + $0x10] sm:$0xff]  ;;  %v3566_v46 = vpack.c.bf16 %v3037_v44, %v3036_v43 }
 0xf89   : > { %3491 = vmatprep.subr.mxu0 %v3647_v6 }
 0xf8b   : > { %3484 = vmatmul.mubr.msk.f32.vlgmr.msra.gmra.mrb[22].mxu0 %vm791_vm2, %v2437_v47  ;;  %v3039_v47 = vld [vmem:[%s4181_s18 + $0x18] sm:$0xff] }
 0xf8c   : > { %3493 = vmatprep.mubr.msk.f32.mxu0 %vm3646_vm0, %v3647_v6  ;;  %3492 = vmatpush3.msra.mxu0 %v1959_v4 }
 0xf8d   : > { %3501 = vmatprep.subr.mxu0 %v3647_v6 }
0x1052   : > { %v2432_v8 = vpop.f32.mrb[18].mxu1 }
0x1053   : > { %v3480_v48 = vpop.f32.mrb[19].mxu1 }
0x1054   : > { %v3040_v48 = vld [vmem:[%s4181_s18 + $0x20] sm:$0xff] }
0x105a   : > { %v2359_v49 = vpop.f32.mrb[20].mxu0 }
0x105b   : > { %v2433_v50 = vadd.f32 %v2432_v8, %v2359_v49  ;;  %v3475_v51 = vpop.f32.mrb[21].mxu0  ;;  %v3569_v8 = vpack.c.bf16 %v3039_v47, %v3038_v45  ;;  %v3041_v49 = vld [vmem:[%s4181_s18 + $0x28] sm:$0xff] }
0x105e   : > { %v2510_v52 = vpop.f32.mrb[22].mxu0 }
0x105f   : > { %v3485_v53 = vpop.f32.mrb[23].mxu0  ;;  %v2514_v54 = vsel %vm791_vm2, %v2510_v52, -inf }
0x1060   : > { %2515 = vmax.xlane.f32.xlu1 %v2514_v54 }
0x1071   : > { %2677 = vrot.lane.b32.xlu1 %v3987_v7, %s4217_s28 }
0x1075   : > { %2675 = vrot.lane.b32.xlu1 %v3997_v13, %s4217_s28 }
0x10ed   : > { %v2516_v55 = vpop.xlane.xlu1 %2515 }
0x10ee   : > { %v2517_v56 = vsub.f32 %v2510_v52, %v2516_v55  ;;  %v3271_v55 = vld [vmem:[%s4177_s14] ss:$0 sm:$0xff] }
0x10f0   : > { %v2518_v57 = vmul.f32 1.442695, %v2517_v56 }
0x10f1   : > { %v2678_v63 = vpop.permute.xlu1 %2677 }
0x10f2   : > { %3625 = vpow2.f32 %v2518_v57  ;;  %v3272_v57 = vld [vmem:[%s4178_s15] ss:$0 sm:$0xff] }
0x10f5   : > { %v2676_v1 = vpop.permute.xlu1 %2675 }
0x10fc   : > { %v3626_v58 = vpop.eup %3625 }
0x10fd   : > { %v2520_v59 = vsel %vm791_vm2, %v3626_v58, 0.0 }
0x10fe   : > { %2521 = vadd.xlane.f32.xlu0 %v2520_v59 }
0x1114   : > { %2525 = vrot.lane.b32.xlu0 %v3987_v7, %s4218_s0 }
0x118b   : > { %v2522_v60 = vpop.xlane.xlu0 %2521 }
0x118c   : > { %3627 = vrcp.f32 %v2522_v60  ;;  %v3043_v60 = vld [vmem:[%s4181_s18 + $0x38] sm:$0xff] }
0x118f   : > { %v2526_v61 = vpop.permute.xlu0 %2525 }
0x1190   : > { %3487 = vmatpush3.msra.mxu1 %v2526_v61 }
0x1191   : > { %3496 = vmatprep.subr.mxu1 %v3647_v6 }
0x1196   : > { %v3628_v62 = vpop.eup %3627 }
0x1197   : > { %v2524_v0 = vmul.f32 %v3628_v62, %v3626_v58  ;;  %v3273_v62 = vld [vmem:[%s4180_s17] ss:$0 sm:$0xff] }
0x1199   : > { %3489 = vmatmul.mubr.msk.f32.vlgmr.msra.gmra.mrb[20].mxu1 %vm791_vm2, %v2524_v0 }
0x119a   : > { %3497 = vmatpush3.xpose.msk.msra.mxu1 %vm791_vm2, %v2678_v63  ;;  %3498 = vmatprep.mubr.msk.f32.mxu1 %vm3646_vm0, %v3647_v6 }
0x119b   : > { %3506 = vmatprep.subr.mxu1 %v3647_v6 }
0x119d   : > { %3499 = vmatmul.mubr.msk.f32.vlgmr.msra.gmra.mrb[22].mxu1 %vm791_vm2, %v2676_v1 }
0x119e   : > { %3508 = vmatprep.mubr.msk.f32.mxu1 %vm3646_vm0, %v3647_v6  ;;  %3507 = vmatpush3.msra.mxu1 %v1960_v22 }
0x119f   : > { %3565 = vmatprep.subr.bf16.mxu1 %v3645_v3 }
0x126c   : > { %v2597_v5 = vpop.f32.mrb[20].mxu1 }
0x126d   : > { %v3490_v9 = vpop.f32.mrb[21].mxu1  ;;  %3494 = vmatmul.mubr.msk.f32.vlgmr.msra.gmra.mrb[24].mxu0 %vm791_vm2, %v2597_v5  ;;  %v3275_v5 = vld [vmem:[%s4182_s19] ss:$0 sm:$0xff] }
0x126e   : > { %3503 = vmatprep.mubr.msk.f32.mxu0 %vm3646_vm0, %v3647_v6 }
0x1270   : > { %v2749_v10 = vpop.f32.mrb[22].mxu1 }
0x1271   : > { %v3500_v12 = vpop.f32.mrb[23].mxu1  ;;  %v2753_v13 = vsel %vm791_vm2, %v2749_v10, -inf }
0x1272   : > { %2754 = vmax.xlane.f32.xlu0 %v2753_v13 }
0x1288   : > { %2764 = vrot.lane.b32.xlu0 %v3987_v7, %s4219_s24 }
0x12ff   : > { %v2755_v14 = vpop.xlane.xlu0 %2754 }
0x1300   : > { %v2756_v15 = vsub.f32 %v2749_v10, %v2755_v14 }
0x1302   : > { %v2757_v16 = vmul.f32 1.442695, %v2756_v15 }
0x1303   : > { %v2765_v19 = vpop.permute.xlu0 %2764 }
0x1304   : > { %3629 = vpow2.f32 %v2757_v16  ;;  %3502 = vmatpush3.msra.mxu0 %v2765_v19 }
0x1305   : > { %3559 = vmatprep.subr.bf16.mxu0 %v3645_v3 }
0x130e   : > { %v3630_v20 = vpop.eup %3629 }
0x130f   : > { %v2759_v21 = vsel %vm791_vm2, %v3630_v20, 0.0 }
0x1310   : > { %2760 = vadd.xlane.f32.xlu1 %v2759_v21 }
0x1340   : > { %v2670_v7 = vpop.f32.mrb[24].mxu0 }
0x1341   : > { %v2674_v23 = vadd.f32 %v2670_v7, %v2433_v50  ;;  %v3495_v24 = vpop.f32.mrb[25].mxu0  ;;  %v3572_v50 = vpack.c.bf16 %v3041_v49, %v3040_v48 }
0x139d   : > { %v2761_v25 = vpop.xlane.xlu1 %2760 }
0x139e   : > { %3631 = vrcp.f32 %v2761_v25  ;;  %v3277_v25 = vld [vmem:[%s4183_s20] ss:$0 sm:$0xff] }
0x13a8   : > { %v3632_v26 = vpop.eup %3631 }
0x13a9   : > { %v2763_v27 = vmul.f32 %v3632_v26, %v3630_v20 }
0x13ab   : > { %3504 = vmatmul.mubr.msk.f32.vlgmr.msra.gmra.mrb[26].mxu0 %vm791_vm2, %v2763_v27  ;;  %v3278_v27 = vld [vmem:[%s4184_s21] ss:$0 sm:$0xff] }
0x13ac   : > { %3519 = vmatprep.mubr.msk.f32.mxu0 %vm3646_vm0, %v3647_v6 }
0x147e   : > { %v2836_v17 = vpop.f32.mrb[26].mxu0 }
0x147f   : > { %v3505_v11 = vpop.f32.mrb[27].mxu0  ;;  %3509 = vmatmul.mubr.msk.f32.vlgmr.msra.gmra.mrb[24].mxu1 %vm791_vm2, %v2836_v17 }
0x1480   : > { %3538 = vmatprep.mubr.msk.f32.mxu1 %vm3646_vm0, %v3647_v6  ;;  %v2951_v6 = vld [vmem:[%s4179_s16] sm:$0xff]  ;;  %3567 = vmatpush3.bf16.msra.mxu1 %v3566_v46 }
0x1481   : > { %v3560_v40 = vpack.c.bf16 %v2952_v39, %v2951_v6  ;;  %3568 = vmatprep.subr.bf16.mxu1 %v3645_v3 }
0x1483   : > { %3561 = vmatpush3.bf16.msra.mxu0 %v3560_v40 }
0x1484   : > { %3562 = vmatprep.subr.bf16.mxu0 %v3645_v3  ;;  %3570 = vmatpush3.bf16.msra.mxu1 %v3569_v8 }
0x1485   : > { %3571 = vmatprep.subr.bf16.mxu1 %v3645_v3 }
0x1488   : > { %3573 = vmatpush3.bf16.msra.mxu1 %v3572_v50 }
0x1489   : > { %3574 = vmatprep.subr.bf16.mxu1 %v3645_v3  ;;  %v3042_v3 = vld [vmem:[%s4181_s18 + $0x30] sm:$0xff] }
0x148a   : > { %v3575_v61 = vpack.c.bf16 %v3043_v60, %v3042_v3 }
0x148c   : > { %3576 = vmatpush3.bf16.msra.mxu1 %v3575_v61 }
0x1552   : > { %v2909_v28 = vpop.f32.mrb[24].mxu1 }
0x1553   : > { %v2913_v29 = vadd.f32 %v2909_v28, %v2674_v23  ;;  %v3510_v30 = vpop.f32.mrb[25].mxu1 }
0x1555   : > { %v2920_v31 = vadd.f32 %v3270_v18, %v2913_v29 }
0x1557   : > { %v2921_v32 = vadd.f32 %v2920_v31, %v3978_v2  ;;  %v2953_v2 = vld [vmem:[%s4179_s16 + $0x10] sm:$0xff] }
0x1558   : > { %v3563_v42 = vpack.c.bf16 %v2954_v41, %v2953_v2 }
0x1559   : > { %v2924_v33 = vsel %vm709_vm1, %v2921_v32, 0.0 }
0x155a   : > { %2925 = vadd.xlane.f32.xlu1 %v2924_v33  ;;  %3564 = vmatpush3.bf16.msra.mxu0 %v3563_v42 }
0x15e7   : > { %v2926_v34 = vpop.xlane.xlu1 %2925 }
0x15e8   : > { %v2927_v35 = vmul.f32 0.03125, %v2926_v34 }
0x15ea   : > { %v2928_v36 = vsub.f32 %v2921_v32, %v2927_v35 }
0x15ec   : > { %v2929_v37 = vmul.f32 %v2928_v36, %v2928_v36 }
0x15ee   : > { %v2930_v38 = vsel %vm709_vm1, %v2929_v37, 0.0 }
0x15ef   : > { %2931 = vadd.xlane.f32.xlu1 %v2930_v38 }
0x167c   : > { %v2932_v51 = vpop.xlane.xlu1 %2931 }
0x167d   : > { %v2933_v52 = vmul.f32 0.03125, %v2932_v51 }
0x167f   : > { %v2934_v53 = vadd.f32 1e-05, %v2933_v52 }
0x1681   : > { %3633 = vrsqrt.f32 %v2934_v53 }
0x168b   : > { %v3634_v54 = vpop.eup %3633 }
0x168c   : > { %v2936_v56 = vmul.f32 %v3634_v54, %v2928_v36 }
0x168e   : > { %v2943_v58 = vmul.f32 %v3271_v55, %v2936_v56 }
0x1690   : > { %v2950_v59 = vadd.f32 %v3272_v57, %v2943_v58 }
0x1692   : > { %3520 = vmatmul.mubr.msk.f32.vlgmr.msra.gmra.mrb[28].mxu0 %vm709_vm1, %v2950_v59 }
0x1765   : > { %v3031_v63 = vpop.f32.mrb[28].mxu0 }
0x1766   : > { %v3032_v0 = vadd.f32 %v3273_v62, %v3031_v63  ;;  %v3521_v1 = vpop.f32.mrb[29].mxu0 }
0x1768   : > { %v3035_v4 = vmax.f32 %v3032_v0, 0.0 }
0x176a   : > { %3539 = vmatmul.mubr.msk.f32.vlgmr.msra.gmra.mrb[26].mxu1 %vm3051_vm4, %v3035_v4 }
0x183d   : > { %v3121_v9 = vpop.f32.mrb[26].mxu1 }
0x183e   : > { %v3122_v10 = vadd.f32 %v3275_v5, %v3121_v9  ;;  %v3540_v12 = vpop.f32.mrb[27].mxu1 }
0x1840   : > { %v3125_v13 = vadd.f32 %v3122_v10, %v2950_v59 }
0x1842   : > { %v3128_v14 = vsel %vm709_vm1, %v3125_v13, 0.0 }
0x1843   : > { %3129 = vadd.xlane.f32.xlu1 %v3128_v14 }
0x18d0   : > { %v3130_v15 = vpop.xlane.xlu1 %3129 }
0x18d1   : > { %v3131_v16 = vmul.f32 0.03125, %v3130_v15 }
0x18d3   : > { %v3132_v19 = vsub.f32 %v3125_v13, %v3131_v16 }
0x18d5   : > { %v3133_v20 = vmul.f32 %v3132_v19, %v3132_v19 }
0x18d7   : > { %v3134_v21 = vsel %vm709_vm1, %v3133_v20, 0.0 }
0x18d8   : > { %3135 = vadd.xlane.f32.xlu1 %v3134_v21 }
0x1965   : > { %v3136_v22 = vpop.xlane.xlu1 %3135 }
0x1966   : > { %v3137_v7 = vmul.f32 0.03125, %v3136_v22 }
0x1968   : > { %v3138_v23 = vadd.f32 1e-05, %v3137_v7 }
0x196a   : > { %3635 = vrsqrt.f32 %v3138_v23 }
0x1974   : > { %v3636_v24 = vpop.eup %3635 }
0x1975   : > { %v3140_v26 = vmul.f32 %v3636_v24, %v3132_v19 }
0x1977   : > { %v3147_v17 = vmul.f32 %v3277_v25, %v3140_v26 }
0x1979   : > { %v3154_v11 = vadd.f32 %v3278_v27, %v3147_v17 }
0x197b   : > { %3155 = vst.msk [vmem:[%s695_s29] sm:$0xff] %vm709_vm1, %v3154_v11 }
0x197c PF: > { %s32_s3 = sadd.s32 1, %s3643_s3  }
0x197d   : > { %p29_p4 = scmp.ge.s32.totalorder %s32_s3, 4  }
0x197f   :  { %31 = sbr.rel (!%p29_p4) target bundleno = 8 (0x8), region = 141 }

</bundles_post_ra>
